<compile_context>
chip_gen: v6e
topology: v6e:2x2x1
jax: 0.10.0
libtpu: 0.0.40
codegen_flags: <defaults>
</compile_context>

<pallas_src>
import math

import jax
import jax.numpy as jnp
from jax.experimental import pallas as pl
from jax.experimental.pallas import tpu as pltpu

# ---- config (Block(config) with n_embd=32, n_inner=None -> 4*hidden, Mamba defaults) ----
D_MODEL = 32                         # config.n_embd
D_INNER = 2 * D_MODEL                # expand * d_model
D_STATE = 16
D_CONV = 4
DT_RANK = math.ceil(D_MODEL / 16)    # 'auto' -> 2
INNER_DIM = 4 * D_MODEL              # config.n_inner is None -> 4 * hidden
RMS_EPS = 1e-5
LN_EPS = 1e-5                        # config.layer_norm_epsilon

BATCH = 2
SEQLEN = 8


def _silu(x):
    return x * (1.0 / (1.0 + jnp.exp(-x)))


def _softplus(x):
    # numerically stable softplus using only exp/log (EUP-friendly)
    return jnp.maximum(x, 0.0) + jnp.log(1.0 + jnp.exp(-jnp.abs(x)))


def block_kernel(x_ref, rms_w_ref, wx_ref, wr_ref, conv_w_ref, conv_b_ref,
                 w_delta_ref, dt_b_ref, w_b_ref, w_c_ref, neg_at_ref, d_ref,
                 out_w_ref, ln_w_ref, ln_b_ref, fc1_w_ref, fc1_b_ref,
                 fc2_w_ref, fc2_b_ref, out_ref, conv_scr, y_scr):
    B, L, D = x_ref.shape
    d_in = d_ref.shape[1]
    n = neg_at_ref.shape[0]
    k = conv_w_ref.shape[0]

    x0 = x_ref[...].astype(jnp.float32)                          # (B, L, D)

    # ---------------- RMSNorm ----------------
    rms = jax.lax.rsqrt(jnp.mean(x0 * x0, axis=-1, keepdims=True) + RMS_EPS)
    xn = x0 * rms * rms_w_ref[...]                               # (B, L, D)
    xn2 = xn.reshape(B * L, D)                                   # flattened for GEMMs

    # ---------------- Mamba: in_proj (split weights -> lane-aligned outputs) ----------------
    xm2 = jnp.dot(xn2, wx_ref[...], preferred_element_type=jnp.float32)    # (BL, d_in)
    res2 = jnp.dot(xn2, wr_ref[...], preferred_element_type=jnp.float32)   # (BL, d_in)
    xm3 = xm2.reshape(B, L, d_in)

    # ------- causal depthwise conv1d: shifted static-slice accumulation (no pad concat) -------
    conv_scr[...] = xm3 * conv_w_ref[k - 1:k, :] + conv_b_ref[...]
    for s in range(1, k):
        conv_scr[:, s:, :] = (conv_scr[:, s:, :]
                              + xm3[:, :L - s, :] * conv_w_ref[k - 1 - s:k - s, :])
    xc3 = _silu(conv_scr[...])                                   # (B, L, d_in)
    xc2 = xc3.reshape(B * L, d_in)

    # ---------------- x_proj (pre-split B/C) and fused delta projection ----------------
    Bm = jnp.dot(xc2, w_b_ref[...],
                 preferred_element_type=jnp.float32).reshape(B, L, n)
    Cm = jnp.dot(xc2, w_c_ref[...],
                 preferred_element_type=jnp.float32).reshape(B, L, n)
    delta = _softplus(
        jnp.dot(xc2, w_delta_ref[...], preferred_element_type=jnp.float32)
        + dt_b_ref[...]).reshape(B, L, d_in)                     # (B, L, d_in)

    # ---------------- selective scan: state (B, n, d_in) -> d_inner on lanes ----------------
    negA_T = neg_at_ref[...]                                     # (n, d_in), precomputed -exp(A_log).T
    state = jnp.zeros((B, n, d_in), jnp.float32)
    for t in range(L):
        d_t = delta[:, t, :]                                     # (B, d_in)
        dA_t = jnp.exp(d_t[:, None, :] * negA_T[None, :, :])     # (B, n, d_in)
        dBu_t = (d_t * xc3[:, t, :])[:, None, :] * Bm[:, t, :][:, :, None]
        state = dA_t * state + dBu_t
        y_t = jnp.sum(state * Cm[:, t, :][:, :, None], axis=1)   # (B, d_in)
        y_scr[:, t:t + 1, :] = y_t[:, None, :]

    y3 = y_scr[...] + xc3 * d_ref[...]                           # (B, L, d_in)
    y2 = y3.reshape(B * L, d_in) * _silu(res2)

    mamba_out = jnp.dot(y2, out_w_ref[...], preferred_element_type=jnp.float32)
    x1 = x0.reshape(B * L, D) + mamba_out                        # residual add

    # ---------------- LayerNorm + MLP (exact GELU) ----------------
    mu = jnp.mean(x1, axis=-1, keepdims=True)
    var = jnp.mean((x1 - mu) ** 2, axis=-1, keepdims=True)
    xln = (x1 - mu) * jax.lax.rsqrt(var + LN_EPS) * ln_w_ref[...] + ln_b_ref[...]

    h = jnp.dot(xln, fc1_w_ref[...], preferred_element_type=jnp.float32) + fc1_b_ref[...]
    h = 0.5 * h * (1.0 + jax.lax.erf(h * 0.7071067811865476))    # nn.GELU (exact)
    mlp_out = jnp.dot(h, fc2_w_ref[...], preferred_element_type=jnp.float32) + fc2_b_ref[...]
    # TODO(synk): nn.Dropout treated as inference-mode identity (no RNG mask applied).

    out_ref[...] = (x1 + mlp_out).reshape(B, L, D).astype(out_ref.dtype)


def block_forward(x, params):
    (rms_w, in_proj_w, conv_w, conv_b, x_proj_w, dt_proj_w, dt_proj_b,
     a_log, d_param, out_proj_w, ln_w, ln_b, fc1_w, fc1_b, fc2_w, fc2_b) = params
    b, L, d = x.shape

    # ---- weight-only transforms hoisted out of the kernel (fused by XLA under jit) ----
    wx = in_proj_w[:, :D_INNER]                       # in_proj split -> lane-aligned outputs
    wr = in_proj_w[:, D_INNER:]
    w_dt = x_proj_w[:, :DT_RANK]
    w_b = x_proj_w[:, DT_RANK:DT_RANK + D_STATE]
    w_c = x_proj_w[:, DT_RANK + D_STATE:]
    w_delta = w_dt @ dt_proj_w                        # (d_in, d_in): x_proj_dt ∘ dt_proj fused
    neg_a_t = (-jnp.exp(a_log)).T                     # (n, d_in): hoisted -exp(A_log)

    kparams = [rms_w, wx, wr, conv_w, conv_b, w_delta, dt_proj_b, w_b, w_c,
               neg_a_t, d_param, out_proj_w, ln_w, ln_b, fc1_w, fc1_b, fc2_w, fc2_b]

    in_specs = [pl.BlockSpec((b, L, d), lambda i: (0, 0, 0))]
    for p in kparams:
        in_specs.append(pl.BlockSpec(p.shape, lambda i, nd=p.ndim: (0,) * nd))

    return pl.pallas_call(
        block_kernel,
        out_shape=jax.ShapeDtypeStruct((b, L, d), x.dtype),
        grid_spec=pltpu.PrefetchScalarGridSpec(
            num_scalar_prefetch=0,
            grid=(1,),                                 # batch folded into one program
            in_specs=in_specs,
            out_specs=pl.BlockSpec((b, L, d), lambda i: (0, 0, 0)),
            scratch_shapes=[pltpu.VMEM((b, L, D_INNER), jnp.float32),   # conv accumulator
                            pltpu.VMEM((b, L, D_INNER), jnp.float32)],  # scan output y
        ),
        compiler_params=pltpu.CompilerParams(
            dimension_semantics=("arbitrary",),
        ),
    )(x, *kparams)


def init_params(key):
    ks = jax.random.split(key, 12)

    def lin(k, fan_in, fan_out):
        bound = 1.0 / math.sqrt(fan_in)
        return jax.random.uniform(k, (fan_in, fan_out), jnp.float32, -bound, bound)

    rms_w = jnp.ones((1, D_MODEL), jnp.float32)
    in_proj_w = lin(ks[0], D_MODEL, 2 * D_INNER)

    cb = 1.0 / math.sqrt(D_CONV)
    conv_w = jax.random.uniform(ks[1], (D_CONV, D_INNER), jnp.float32, -cb, cb)
    conv_b = jax.random.uniform(ks[2], (1, D_INNER), jnp.float32, -cb, cb)

    x_proj_w = lin(ks[3], D_INNER, DT_RANK + 2 * D_STATE)

    dt_init_std = DT_RANK ** -0.5
    dt_proj_w = jax.random.uniform(ks[4], (DT_RANK, D_INNER), jnp.float32,
                                   -dt_init_std, dt_init_std)
    dt = jnp.exp(jax.random.uniform(ks[5], (D_INNER,), jnp.float32)
                 * (math.log(0.1) - math.log(0.001)) + math.log(0.001))
    dt = jnp.clip(dt, 1e-4, None)
    inv_dt = dt + jnp.log(-jnp.expm1(-dt))
    dt_proj_b = inv_dt[None, :].astype(jnp.float32)

    a_log = jnp.log(jnp.broadcast_to(
        jnp.arange(1, D_STATE + 1, dtype=jnp.float32)[None, :], (D_INNER, D_STATE)))
    d_param = jnp.ones((1, D_INNER), jnp.float32)
    out_proj_w = lin(ks[6], D_INNER, D_MODEL)

    ln_w = jnp.ones((1, D_MODEL), jnp.float32)
    ln_b = jnp.zeros((1, D_MODEL), jnp.float32)
    fc1_w = lin(ks[7], D_MODEL, INNER_DIM)
    fc1_b = jax.random.uniform(ks[8], (1, INNER_DIM), jnp.float32,
                               -1.0 / math.sqrt(D_MODEL), 1.0 / math.sqrt(D_MODEL))
    fc2_w = lin(ks[9], INNER_DIM, D_MODEL)
    fc2_b = jax.random.uniform(ks[10], (1, D_MODEL), jnp.float32,
                               -1.0 / math.sqrt(INNER_DIM), 1.0 / math.sqrt(INNER_DIM))

    return [rms_w, in_proj_w, conv_w, conv_b, x_proj_w, dt_proj_w, dt_proj_b,
            a_log, d_param, out_proj_w, ln_w, ln_b, fc1_w, fc1_b, fc2_w, fc2_b]


def block_reference(x, params):
    (rms_w, in_proj_w, conv_w, conv_b, x_proj_w, dt_proj_w, dt_proj_b,
     a_log, d_param, out_proj_w, ln_w, ln_b, fc1_w, fc1_b, fc2_w, fc2_b) = params
    b, L, d = x.shape
    x0 = x.astype(jnp.float32)
    rms = jax.lax.rsqrt(jnp.mean(x0 * x0, axis=-1, keepdims=True) + RMS_EPS)
    xn = x0 * rms * rms_w[0]
    xr = xn @ in_proj_w
    xm, res = xr[..., :D_INNER], xr[..., D_INNER:]
    x_pad = jnp.pad(xm, ((0, 0), (D_CONV - 1, 0), (0, 0)))
    conv = jnp.zeros_like(xm)
    for kk in range(D_CONV):
        conv = conv + x_pad[:, kk:kk + L, :] * conv_w[kk]
    conv = conv + conv_b[0]
    xc = conv * jax.nn.sigmoid(conv)
    x_dbl = xc @ x_proj_w
    delta_lo = x_dbl[..., :DT_RANK]
    Bm = x_dbl[..., DT_RANK:DT_RANK + D_STATE]
    Cm = x_dbl[..., DT_RANK + D_STATE:]
    delta = jax.nn.softplus(delta_lo @ dt_proj_w + dt_proj_b[0])
    A = -jnp.exp(a_log)
    dA = jnp.exp(delta[..., None] * A[None, None, :, :])
    dBu = delta[..., None] * Bm[:, :, None, :] * xc[..., None]
    state = jnp.zeros((b, D_INNER, D_STATE), jnp.float32)
    ys = []
    for t in range(L):
        state = dA[:, t] * state + dBu[:, t]
        ys.append(jnp.einsum('bdn,bn->bd', state, Cm[:, t]))
    y = jnp.stack(ys, axis=1)
    y = y + xc * d_param[0]
    y = y * (res * jax.nn.sigmoid(res))
    x1 = x0 + y @ out_proj_w
    mu = jnp.mean(x1, axis=-1, keepdims=True)
    var = jnp.mean((x1 - mu) ** 2, axis=-1, keepdims=True)
    xln = (x1 - mu) * jax.lax.rsqrt(var + LN_EPS) * ln_w[0] + ln_b[0]
    h = xln @ fc1_w + fc1_b[0]
    h = 0.5 * h * (1.0 + jax.lax.erf(h * 0.7071067811865476))
    return x1 + h @ fc2_w + fc2_b[0]


if __name__ == "__main__":
    key = jax.random.PRNGKey(0)
    kx, kp = jax.random.split(key)
    x = jax.random.normal(kx, (BATCH, SEQLEN, D_MODEL), jnp.float32)
    params = init_params(kp)

    out = jax.jit(block_forward)(x, params)
    jax.block_until_ready(out)

    ref = block_reference(x, params)
    assert out.shape == (BATCH, SEQLEN, D_MODEL)
    assert jnp.allclose(out, ref, atol=1e-4, rtol=1e-4), float(jnp.max(jnp.abs(out - ref)))
    print("KERNEL_OK")
</pallas_src>

<mosaic_0001>
module attributes {stable_mosaic.version = 11 : i64} {
  func.func @block_kernel(%arg0: i32, %arg1: memref<2x8x32xf32, #tpu.memory_space<vmem>>, %arg2: memref<1x32xf32, #tpu.memory_space<vmem>>, %arg3: memref<32x64xf32, #tpu.memory_space<vmem>>, %arg4: memref<32x64xf32, #tpu.memory_space<vmem>>, %arg5: memref<4x64xf32, #tpu.memory_space<vmem>>, %arg6: memref<1x64xf32, #tpu.memory_space<vmem>>, %arg7: memref<64x64xf32, #tpu.memory_space<vmem>>, %arg8: memref<1x64xf32, #tpu.memory_space<vmem>>, %arg9: memref<64x16xf32, #tpu.memory_space<vmem>>, %arg10: memref<64x16xf32, #tpu.memory_space<vmem>>, %arg11: memref<16x64xf32, #tpu.memory_space<vmem>>, %arg12: memref<1x64xf32, #tpu.memory_space<vmem>>, %arg13: memref<64x32xf32, #tpu.memory_space<vmem>>, %arg14: memref<1x32xf32, #tpu.memory_space<vmem>>, %arg15: memref<1x32xf32, #tpu.memory_space<vmem>>, %arg16: memref<32x128xf32, #tpu.memory_space<vmem>>, %arg17: memref<1x128xf32, #tpu.memory_space<vmem>>, %arg18: memref<128x32xf32, #tpu.memory_space<vmem>>, %arg19: memref<1x32xf32, #tpu.memory_space<vmem>>, %arg20: memref<2x8x32xf32, #tpu.memory_space<vmem>>, %arg21: memref<2x8x64xf32, #tpu.memory_space<vmem>>, %arg22: memref<2x8x64xf32, #tpu.memory_space<vmem>>) attributes {dimension_semantics = [#tpu.dimension_semantics<arbitrary>], iteration_bounds = array<i64: 1>, scalar_prefetch = 0 : i64, scratch_operands = 2 : i64, tpu.core_type = #tpu.core_type<tc>, window_params = [{pipeline_mode = #tpu.pipeline_mode<synchronous>, transform_indices = @transform_0, window_bounds = array<i64: 2, 8, 32>}, {pipeline_mode = #tpu.pipeline_mode<synchronous>, transform_indices = @transform_1, window_bounds = array<i64: 1, 32>}, {pipeline_mode = #tpu.pipeline_mode<synchronous>, transform_indices = @transform_2, window_bounds = array<i64: 32, 64>}, {pipeline_mode = #tpu.pipeline_mode<synchronous>, transform_indices = @transform_3, window_bounds = array<i64: 32, 64>}, {pipeline_mode = #tpu.pipeline_mode<synchronous>, transform_indices = @transform_4, window_bounds = array<i64: 4, 64>}, {pipeline_mode = #tpu.pipeline_mode<synchronous>, transform_indices = @transform_5, window_bounds = array<i64: 1, 64>}, {pipeline_mode = #tpu.pipeline_mode<synchronous>, transform_indices = @transform_6, window_bounds = array<i64: 64, 64>}, {pipeline_mode = #tpu.pipeline_mode<synchronous>, transform_indices = @transform_7, window_bounds = array<i64: 1, 64>}, {pipeline_mode = #tpu.pipeline_mode<synchronous>, transform_indices = @transform_8, window_bounds = array<i64: 64, 16>}, {pipeline_mode = #tpu.pipeline_mode<synchronous>, transform_indices = @transform_9, window_bounds = array<i64: 64, 16>}, {pipeline_mode = #tpu.pipeline_mode<synchronous>, transform_indices = @transform_10, window_bounds = array<i64: 16, 64>}, {pipeline_mode = #tpu.pipeline_mode<synchronous>, transform_indices = @transform_11, window_bounds = array<i64: 1, 64>}, {pipeline_mode = #tpu.pipeline_mode<synchronous>, transform_indices = @transform_12, window_bounds = array<i64: 64, 32>}, {pipeline_mode = #tpu.pipeline_mode<synchronous>, transform_indices = @transform_13, window_bounds = array<i64: 1, 32>}, {pipeline_mode = #tpu.pipeline_mode<synchronous>, transform_indices = @transform_14, window_bounds = array<i64: 1, 32>}, {pipeline_mode = #tpu.pipeline_mode<synchronous>, transform_indices = @transform_15, window_bounds = array<i64: 32, 128>}, {pipeline_mode = #tpu.pipeline_mode<synchronous>, transform_indices = @transform_16, window_bounds = array<i64: 1, 128>}, {pipeline_mode = #tpu.pipeline_mode<synchronous>, transform_indices = @transform_17, window_bounds = array<i64: 128, 32>}, {pipeline_mode = #tpu.pipeline_mode<synchronous>, transform_indices = @transform_18, window_bounds = array<i64: 1, 32>}, {pipeline_mode = #tpu.pipeline_mode<synchronous>, transform_indices = @transform_19, window_bounds = array<i64: 2, 8, 32>}]} {
    %c0 = arith.constant 0 : index
    %c0_0 = arith.constant 0 : index
    %c0_1 = arith.constant 0 : index
    %0 = vector.load %arg1[%c0, %c0_0, %c0_1] : memref<2x8x32xf32, #tpu.memory_space<vmem>>, vector<2x8x32xf32>
    %1 = arith.mulf %0, %0 : vector<2x8x32xf32>
    %cst = arith.constant dense<0.000000e+00> : vector<2x8xf32>
    %2 = vector.multi_reduction <add>, %1, %cst [2] : vector<2x8x32xf32> to vector<2x8xf32>
    %3 = vector.shape_cast %2 : vector<2x8xf32> to vector<2x8x1xf32>
    %cst_2 = arith.constant 3.200000e+01 : f32
    %4 = vector.broadcast %cst_2 : f32 to vector<2x8x1xf32>
    %5 = arith.divf %3, %4 : vector<2x8x1xf32>
    %cst_3 = arith.constant 9.99999974E-6 : f32
    %6 = vector.broadcast %cst_3 : f32 to vector<2x8x1xf32>
    %7 = arith.addf %5, %6 : vector<2x8x1xf32>
    %8 = math.rsqrt %7 : vector<2x8x1xf32>
    %9 = vector.broadcast %8 : vector<2x8x1xf32> to vector<2x8x32xf32>
    %10 = arith.mulf %0, %9 : vector<2x8x32xf32>
    %c0_4 = arith.constant 0 : index
    %c0_5 = arith.constant 0 : index
    %11 = vector.load %arg2[%c0_4, %c0_5] : memref<1x32xf32, #tpu.memory_space<vmem>>, vector<1x32xf32>
    %12 = vector.shape_cast %11 : vector<1x32xf32> to vector<1x1x32xf32>
    %13 = vector.broadcast %12 : vector<1x1x32xf32> to vector<2x8x32xf32>
    %14 = arith.mulf %10, %13 : vector<2x8x32xf32>
    %15 = vector.shape_cast %14 : vector<2x8x32xf32> to vector<16x32xf32>
    %c0_6 = arith.constant 0 : index
    %c0_7 = arith.constant 0 : index
    %16 = vector.load %arg3[%c0_6, %c0_7] : memref<32x64xf32, #tpu.memory_space<vmem>>, vector<32x64xf32>
    %cst_8 = arith.constant dense<0.000000e+00> : vector<16x64xf32>
    %17 = tpu.matmul %15, %16, %cst_8 {dimension_numbers = #tpu.dot_dimension_numbers<[1], [0], [0], [1], [0, 0, 1, 1], [], []>} : vector<16x32xf32>, vector<32x64xf32>, vector<16x64xf32> -> vector<16x64xf32>
    %c0_9 = arith.constant 0 : index
    %c0_10 = arith.constant 0 : index
    %18 = vector.load %arg4[%c0_9, %c0_10] : memref<32x64xf32, #tpu.memory_space<vmem>>, vector<32x64xf32>
    %cst_11 = arith.constant dense<0.000000e+00> : vector<16x64xf32>
    %19 = tpu.matmul %15, %18, %cst_11 {dimension_numbers = #tpu.dot_dimension_numbers<[1], [0], [0], [1], [0, 0, 1, 1], [], []>} : vector<16x32xf32>, vector<32x64xf32>, vector<16x64xf32> -> vector<16x64xf32>
    %20 = vector.shape_cast %17 : vector<16x64xf32> to vector<2x8x64xf32>
    %c3 = arith.constant 3 : index
    %c0_12 = arith.constant 0 : index
    %21 = vector.load %arg5[%c3, %c0_12] : memref<4x64xf32, #tpu.memory_space<vmem>>, vector<1x64xf32>
    %22 = vector.shape_cast %21 : vector<1x64xf32> to vector<1x1x64xf32>
    %23 = vector.broadcast %22 : vector<1x1x64xf32> to vector<2x8x64xf32>
    %24 = arith.mulf %20, %23 : vector<2x8x64xf32>
    %c0_13 = arith.constant 0 : index
    %c0_14 = arith.constant 0 : index
    %25 = vector.load %arg6[%c0_13, %c0_14] : memref<1x64xf32, #tpu.memory_space<vmem>>, vector<1x64xf32>
    %26 = vector.shape_cast %25 : vector<1x64xf32> to vector<1x1x64xf32>
    %27 = vector.broadcast %26 : vector<1x1x64xf32> to vector<2x8x64xf32>
    %28 = arith.addf %24, %27 : vector<2x8x64xf32>
    %c0_15 = arith.constant 0 : index
    %c0_16 = arith.constant 0 : index
    %c0_17 = arith.constant 0 : index
    %29 = vector.load %arg21[%c0_15, %c0_16, %c0_17] : memref<2x8x64xf32, #tpu.memory_space<vmem>>, vector<2x8x64xf32>
    tpu.vector_store %arg21[%c0_15, %c0_16, %c0_17], %28 {strides = array<i32>} : memref<2x8x64xf32, #tpu.memory_space<vmem>>, vector<2x8x64xf32>,
    %c0_18 = arith.constant 0 : index
    %c1 = arith.constant 1 : index
    %c0_19 = arith.constant 0 : index
    %30 = vector.load %arg21[%c0_18, %c1, %c0_19] : memref<2x8x64xf32, #tpu.memory_space<vmem>>, vector<2x7x64xf32>
    %31 = vector.extract_strided_slice %20 {offsets = [0, 0, 0], sizes = [2, 7, 64], strides = [1, 1, 1]} : vector<2x8x64xf32> to vector<2x7x64xf32>
    %c2 = arith.constant 2 : index
    %c0_20 = arith.constant 0 : index
    %32 = vector.load %arg5[%c2, %c0_20] : memref<4x64xf32, #tpu.memory_space<vmem>>, vector<1x64xf32>
    %33 = vector.shape_cast %32 : vector<1x64xf32> to vector<1x1x64xf32>
    %34 = vector.broadcast %33 : vector<1x1x64xf32> to vector<2x7x64xf32>
    %35 = arith.mulf %31, %34 : vector<2x7x64xf32>
    %36 = arith.addf %30, %35 : vector<2x7x64xf32>
    %c0_21 = arith.constant 0 : index
    %c1_22 = arith.constant 1 : index
    %c0_23 = arith.constant 0 : index
    %37 = vector.load %arg21[%c0_21, %c1_22, %c0_23] : memref<2x8x64xf32, #tpu.memory_space<vmem>>, vector<2x7x64xf32>
    tpu.vector_store %arg21[%c0_21, %c1_22, %c0_23], %36 {strides = array<i32>} : memref<2x8x64xf32, #tpu.memory_space<vmem>>, vector<2x7x64xf32>,
    %c0_24 = arith.constant 0 : index
    %c2_25 = arith.constant 2 : index
    %c0_26 = arith.constant 0 : index
    %38 = vector.load %arg21[%c0_24, %c2_25, %c0_26] : memref<2x8x64xf32, #tpu.memory_space<vmem>>, vector<2x6x64xf32>
    %39 = vector.extract_strided_slice %20 {offsets = [0, 0, 0], sizes = [2, 6, 64], strides = [1, 1, 1]} : vector<2x8x64xf32> to vector<2x6x64xf32>
    %c1_27 = arith.constant 1 : index
    %c0_28 = arith.constant 0 : index
    %40 = vector.load %arg5[%c1_27, %c0_28] : memref<4x64xf32, #tpu.memory_space<vmem>>, vector<1x64xf32>
    %41 = vector.shape_cast %40 : vector<1x64xf32> to vector<1x1x64xf32>
    %42 = vector.broadcast %41 : vector<1x1x64xf32> to vector<2x6x64xf32>
    %43 = arith.mulf %39, %42 : vector<2x6x64xf32>
    %44 = arith.addf %38, %43 : vector<2x6x64xf32>
    %c0_29 = arith.constant 0 : index
    %c2_30 = arith.constant 2 : index
    %c0_31 = arith.constant 0 : index
    %45 = vector.load %arg21[%c0_29, %c2_30, %c0_31] : memref<2x8x64xf32, #tpu.memory_space<vmem>>, vector<2x6x64xf32>
    tpu.vector_store %arg21[%c0_29, %c2_30, %c0_31], %44 {strides = array<i32>} : memref<2x8x64xf32, #tpu.memory_space<vmem>>, vector<2x6x64xf32>,
    %c0_32 = arith.constant 0 : index
    %c3_33 = arith.constant 3 : index
    %c0_34 = arith.constant 0 : index
    %46 = vector.load %arg21[%c0_32, %c3_33, %c0_34] : memref<2x8x64xf32, #tpu.memory_space<vmem>>, vector<2x5x64xf32>
    %47 = vector.extract_strided_slice %20 {offsets = [0, 0, 0], sizes = [2, 5, 64], strides = [1, 1, 1]} : vector<2x8x64xf32> to vector<2x5x64xf32>
    %c0_35 = arith.constant 0 : index
    %c0_36 = arith.constant 0 : index
    %48 = vector.load %arg5[%c0_35, %c0_36] : memref<4x64xf32, #tpu.memory_space<vmem>>, vector<1x64xf32>
    %49 = vector.shape_cast %48 : vector<1x64xf32> to vector<1x1x64xf32>
    %50 = vector.broadcast %49 : vector<1x1x64xf32> to vector<2x5x64xf32>
    %51 = arith.mulf %47, %50 : vector<2x5x64xf32>
    %52 = arith.addf %46, %51 : vector<2x5x64xf32>
    %c0_37 = arith.constant 0 : index
    %c3_38 = arith.constant 3 : index
    %c0_39 = arith.constant 0 : index
    %53 = vector.load %arg21[%c0_37, %c3_38, %c0_39] : memref<2x8x64xf32, #tpu.memory_space<vmem>>, vector<2x5x64xf32>
    tpu.vector_store %arg21[%c0_37, %c3_38, %c0_39], %52 {strides = array<i32>} : memref<2x8x64xf32, #tpu.memory_space<vmem>>, vector<2x5x64xf32>,
    %c0_40 = arith.constant 0 : index
    %c0_41 = arith.constant 0 : index
    %c0_42 = arith.constant 0 : index
    %54 = vector.load %arg21[%c0_40, %c0_41, %c0_42] : memref<2x8x64xf32, #tpu.memory_space<vmem>>, vector<2x8x64xf32>
    %cst_43 = arith.constant 0.000000e+00 : f32
    %55 = vector.broadcast %cst_43 : f32 to vector<2x8x64xf32>
    %56 = arith.subf %55, %54 : vector<2x8x64xf32>
    %57 = math.exp %56 : vector<2x8x64xf32>
    %cst_44 = arith.constant 1.000000e+00 : f32
    %58 = vector.broadcast %cst_44 : f32 to vector<2x8x64xf32>
    %59 = arith.addf %58, %57 : vector<2x8x64xf32>
    %cst_45 = arith.constant 1.000000e+00 : f32
    %60 = vector.broadcast %cst_45 : f32 to vector<2x8x64xf32>
    %61 = arith.divf %60, %59 : vector<2x8x64xf32>
    %62 = arith.mulf %54, %61 : vector<2x8x64xf32>
    %63 = vector.shape_cast %62 : vector<2x8x64xf32> to vector<16x64xf32>
    %c0_46 = arith.constant 0 : index
    %c0_47 = arith.constant 0 : index
    %64 = vector.load %arg9[%c0_46, %c0_47] : memref<64x16xf32, #tpu.memory_space<vmem>>, vector<64x16xf32>
    %cst_48 = arith.constant dense<0.000000e+00> : vector<16x16xf32>
    %65 = tpu.matmul %63, %64, %cst_48 {dimension_numbers = #tpu.dot_dimension_numbers<[1], [0], [0], [1], [0, 0, 1, 1], [], []>} : vector<16x64xf32>, vector<64x16xf32>, vector<16x16xf32> -> vector<16x16xf32>
    %66 = vector.shape_cast %65 : vector<16x16xf32> to vector<2x8x16xf32>
    %c0_49 = arith.constant 0 : index
    %c0_50 = arith.constant 0 : index
    %67 = vector.load %arg10[%c0_49, %c0_50] : memref<64x16xf32, #tpu.memory_space<vmem>>, vector<64x16xf32>
    %cst_51 = arith.constant dense<0.000000e+00> : vector<16x16xf32>
    %68 = tpu.matmul %63, %67, %cst_51 {dimension_numbers = #tpu.dot_dimension_numbers<[1], [0], [0], [1], [0, 0, 1, 1], [], []>} : vector<16x64xf32>, vector<64x16xf32>, vector<16x16xf32> -> vector<16x16xf32>
    %69 = vector.shape_cast %68 : vector<16x16xf32> to vector<2x8x16xf32>
    %c0_52 = arith.constant 0 : index
    %c0_53 = arith.constant 0 : index
    %70 = vector.load %arg7[%c0_52, %c0_53] : memref<64x64xf32, #tpu.memory_space<vmem>>, vector<64x64xf32>
    %cst_54 = arith.constant dense<0.000000e+00> : vector<16x64xf32>
    %71 = tpu.matmul %63, %70, %cst_54 {dimension_numbers = #tpu.dot_dimension_numbers<[1], [0], [0], [1], [0, 0, 1, 1], [], []>} : vector<16x64xf32>, vector<64x64xf32>, vector<16x64xf32> -> vector<16x64xf32>
    %c0_55 = arith.constant 0 : index
    %c0_56 = arith.constant 0 : index
    %72 = vector.load %arg8[%c0_55, %c0_56] : memref<1x64xf32, #tpu.memory_space<vmem>>, vector<1x64xf32>
    %73 = vector.broadcast %72 : vector<1x64xf32> to vector<16x64xf32>
    %74 = arith.addf %71, %73 : vector<16x64xf32>
    %cst_57 = arith.constant 0.000000e+00 : f32
    %75 = vector.broadcast %cst_57 : f32 to vector<16x64xf32>
    %76 = arith.maximumf %74, %75 : vector<16x64xf32>
    %77 = math.absf %74 : vector<16x64xf32>
    %cst_58 = arith.constant 0.000000e+00 : f32
    %78 = vector.broadcast %cst_58 : f32 to vector<16x64xf32>
    %79 = arith.subf %78, %77 : vector<16x64xf32>
    %80 = math.exp %79 : vector<16x64xf32>
    %cst_59 = arith.constant 1.000000e+00 : f32
    %81 = vector.broadcast %cst_59 : f32 to vector<16x64xf32>
    %82 = arith.addf %81, %80 : vector<16x64xf32>
    %83 = math.log %82 : vector<16x64xf32>
    %84 = arith.addf %76, %83 : vector<16x64xf32>
    %85 = vector.shape_cast %84 : vector<16x64xf32> to vector<2x8x64xf32>
    %c0_60 = arith.constant 0 : index
    %c0_61 = arith.constant 0 : index
    %86 = vector.load %arg11[%c0_60, %c0_61] : memref<16x64xf32, #tpu.memory_space<vmem>>, vector<16x64xf32>
    %cst_62 = arith.constant 0.000000e+00 : f32
    %87 = vector.broadcast %cst_62 : f32 to vector<2x16x64xf32>
    %88 = vector.extract_strided_slice %85 {offsets = [0, 0, 0], sizes = [2, 1, 64], strides = [1, 1, 1]} : vector<2x8x64xf32> to vector<2x1x64xf32>
    %89 = vector.shape_cast %88 : vector<2x1x64xf32> to vector<2x64xf32>
    %90 = vector.shape_cast %89 : vector<2x64xf32> to vector<2x1x64xf32>
    %91 = vector.shape_cast %86 : vector<16x64xf32> to vector<1x16x64xf32>
    %92 = vector.broadcast %90 : vector<2x1x64xf32> to vector<2x16x64xf32>
    %93 = vector.broadcast %91 : vector<1x16x64xf32> to vector<2x16x64xf32>
    %94 = arith.mulf %92, %93 : vector<2x16x64xf32>
    %95 = math.exp %94 : vector<2x16x64xf32>
    %96 = vector.extract_strided_slice %62 {offsets = [0, 0, 0], sizes = [2, 1, 64], strides = [1, 1, 1]} : vector<2x8x64xf32> to vector<2x1x64xf32>
    %97 = vector.shape_cast %96 : vector<2x1x64xf32> to vector<2x64xf32>
    %98 = arith.mulf %89, %97 : vector<2x64xf32>
    %99 = vector.shape_cast %98 : vector<2x64xf32> to vector<2x1x64xf32>
    %100 = vector.extract_strided_slice %66 {offsets = [0, 0, 0], sizes = [2, 1, 16], strides = [1, 1, 1]} : vector<2x8x16xf32> to vector<2x1x16xf32>
    %101 = vector.shape_cast %100 : vector<2x1x16xf32> to vector<2x16xf32>
    %102 = vector.shape_cast %101 : vector<2x16xf32> to vector<2x16x1xf32>
    %103 = vector.broadcast %99 : vector<2x1x64xf32> to vector<2x16x64xf32>
    %104 = vector.broadcast %102 : vector<2x16x1xf32> to vector<2x16x64xf32>
    %105 = arith.mulf %103, %104 : vector<2x16x64xf32>
    %106 = arith.mulf %95, %87 : vector<2x16x64xf32>
    %107 = arith.addf %106, %105 : vector<2x16x64xf32>
    %108 = vector.extract_strided_slice %69 {offsets = [0, 0, 0], sizes = [2, 1, 16], strides = [1, 1, 1]} : vector<2x8x16xf32> to vector<2x1x16xf32>
    %109 = vector.shape_cast %108 : vector<2x1x16xf32> to vector<2x16xf32>
    %110 = vector.shape_cast %109 : vector<2x16xf32> to vector<2x16x1xf32>
    %111 = vector.broadcast %110 : vector<2x16x1xf32> to vector<2x16x64xf32>
    %112 = arith.mulf %107, %111 : vector<2x16x64xf32>
    %cst_63 = arith.constant dense<0.000000e+00> : vector<2x64xf32>
    %113 = vector.multi_reduction <add>, %112, %cst_63 [1] : vector<2x16x64xf32> to vector<2x64xf32>
    %114 = vector.shape_cast %113 : vector<2x64xf32> to vector<2x1x64xf32>
    %c0_64 = arith.constant 0 : index
    %c0_65 = arith.constant 0 : index
    %c0_66 = arith.constant 0 : index
    %115 = vector.load %arg22[%c0_64, %c0_65, %c0_66] : memref<2x8x64xf32, #tpu.memory_space<vmem>>, vector<2x1x64xf32>
    tpu.vector_store %arg22[%c0_64, %c0_65, %c0_66], %114 {strides = array<i32>} : memref<2x8x64xf32, #tpu.memory_space<vmem>>, vector<2x1x64xf32>,
    %116 = vector.extract_strided_slice %85 {offsets = [0, 1, 0], sizes = [2, 1, 64], strides = [1, 1, 1]} : vector<2x8x64xf32> to vector<2x1x64xf32>
    %117 = vector.shape_cast %116 : vector<2x1x64xf32> to vector<2x64xf32>
    %118 = vector.shape_cast %117 : vector<2x64xf32> to vector<2x1x64xf32>
    %119 = vector.shape_cast %86 : vector<16x64xf32> to vector<1x16x64xf32>
    %120 = vector.broadcast %118 : vector<2x1x64xf32> to vector<2x16x64xf32>
    %121 = vector.broadcast %119 : vector<1x16x64xf32> to vector<2x16x64xf32>
    %122 = arith.mulf %120, %121 : vector<2x16x64xf32>
    %123 = math.exp %122 : vector<2x16x64xf32>
    %124 = vector.extract_strided_slice %62 {offsets = [0, 1, 0], sizes = [2, 1, 64], strides = [1, 1, 1]} : vector<2x8x64xf32> to vector<2x1x64xf32>
    %125 = vector.shape_cast %124 : vector<2x1x64xf32> to vector<2x64xf32>
    %126 = arith.mulf %117, %125 : vector<2x64xf32>
    %127 = vector.shape_cast %126 : vector<2x64xf32> to vector<2x1x64xf32>
    %128 = vector.extract_strided_slice %66 {offsets = [0, 1, 0], sizes = [2, 1, 16], strides = [1, 1, 1]} : vector<2x8x16xf32> to vector<2x1x16xf32>
    %129 = vector.shape_cast %128 : vector<2x1x16xf32> to vector<2x16xf32>
    %130 = vector.shape_cast %129 : vector<2x16xf32> to vector<2x16x1xf32>
    %131 = vector.broadcast %127 : vector<2x1x64xf32> to vector<2x16x64xf32>
    %132 = vector.broadcast %130 : vector<2x16x1xf32> to vector<2x16x64xf32>
    %133 = arith.mulf %131, %132 : vector<2x16x64xf32>
    %134 = arith.mulf %123, %107 : vector<2x16x64xf32>
    %135 = arith.addf %134, %133 : vector<2x16x64xf32>
    %136 = vector.extract_strided_slice %69 {offsets = [0, 1, 0], sizes = [2, 1, 16], strides = [1, 1, 1]} : vector<2x8x16xf32> to vector<2x1x16xf32>
    %137 = vector.shape_cast %136 : vector<2x1x16xf32> to vector<2x16xf32>
    %138 = vector.shape_cast %137 : vector<2x16xf32> to vector<2x16x1xf32>
    %139 = vector.broadcast %138 : vector<2x16x1xf32> to vector<2x16x64xf32>
    %140 = arith.mulf %135, %139 : vector<2x16x64xf32>
    %cst_67 = arith.constant dense<0.000000e+00> : vector<2x64xf32>
    %141 = vector.multi_reduction <add>, %140, %cst_67 [1] : vector<2x16x64xf32> to vector<2x64xf32>
    %142 = vector.shape_cast %141 : vector<2x64xf32> to vector<2x1x64xf32>
    %c0_68 = arith.constant 0 : index
    %c1_69 = arith.constant 1 : index
    %c0_70 = arith.constant 0 : index
    %143 = vector.load %arg22[%c0_68, %c1_69, %c0_70] : memref<2x8x64xf32, #tpu.memory_space<vmem>>, vector<2x1x64xf32>
    tpu.vector_store %arg22[%c0_68, %c1_69, %c0_70], %142 {strides = array<i32>} : memref<2x8x64xf32, #tpu.memory_space<vmem>>, vector<2x1x64xf32>,
    %144 = vector.extract_strided_slice %85 {offsets = [0, 2, 0], sizes = [2, 1, 64], strides = [1, 1, 1]} : vector<2x8x64xf32> to vector<2x1x64xf32>
    %145 = vector.shape_cast %144 : vector<2x1x64xf32> to vector<2x64xf32>
    %146 = vector.shape_cast %145 : vector<2x64xf32> to vector<2x1x64xf32>
    %147 = vector.shape_cast %86 : vector<16x64xf32> to vector<1x16x64xf32>
    %148 = vector.broadcast %146 : vector<2x1x64xf32> to vector<2x16x64xf32>
    %149 = vector.broadcast %147 : vector<1x16x64xf32> to vector<2x16x64xf32>
    %150 = arith.mulf %148, %149 : vector<2x16x64xf32>
    %151 = math.exp %150 : vector<2x16x64xf32>
    %152 = vector.extract_strided_slice %62 {offsets = [0, 2, 0], sizes = [2, 1, 64], strides = [1, 1, 1]} : vector<2x8x64xf32> to vector<2x1x64xf32>
    %153 = vector.shape_cast %152 : vector<2x1x64xf32> to vector<2x64xf32>
    %154 = arith.mulf %145, %153 : vector<2x64xf32>
    %155 = vector.shape_cast %154 : vector<2x64xf32> to vector<2x1x64xf32>
    %156 = vector.extract_strided_slice %66 {offsets = [0, 2, 0], sizes = [2, 1, 16], strides = [1, 1, 1]} : vector<2x8x16xf32> to vector<2x1x16xf32>
    %157 = vector.shape_cast %156 : vector<2x1x16xf32> to vector<2x16xf32>
    %158 = vector.shape_cast %157 : vector<2x16xf32> to vector<2x16x1xf32>
    %159 = vector.broadcast %155 : vector<2x1x64xf32> to vector<2x16x64xf32>
    %160 = vector.broadcast %158 : vector<2x16x1xf32> to vector<2x16x64xf32>
    %161 = arith.mulf %159, %160 : vector<2x16x64xf32>
    %162 = arith.mulf %151, %135 : vector<2x16x64xf32>
    %163 = arith.addf %162, %161 : vector<2x16x64xf32>
    %164 = vector.extract_strided_slice %69 {offsets = [0, 2, 0], sizes = [2, 1, 16], strides = [1, 1, 1]} : vector<2x8x16xf32> to vector<2x1x16xf32>
    %165 = vector.shape_cast %164 : vector<2x1x16xf32> to vector<2x16xf32>
    %166 = vector.shape_cast %165 : vector<2x16xf32> to vector<2x16x1xf32>
    %167 = vector.broadcast %166 : vector<2x16x1xf32> to vector<2x16x64xf32>
    %168 = arith.mulf %163, %167 : vector<2x16x64xf32>
    %cst_71 = arith.constant dense<0.000000e+00> : vector<2x64xf32>
    %169 = vector.multi_reduction <add>, %168, %cst_71 [1] : vector<2x16x64xf32> to vector<2x64xf32>
    %170 = vector.shape_cast %169 : vector<2x64xf32> to vector<2x1x64xf32>
    %c0_72 = arith.constant 0 : index
    %c2_73 = arith.constant 2 : index
    %c0_74 = arith.constant 0 : index
    %171 = vector.load %arg22[%c0_72, %c2_73, %c0_74] : memref<2x8x64xf32, #tpu.memory_space<vmem>>, vector<2x1x64xf32>
    tpu.vector_store %arg22[%c0_72, %c2_73, %c0_74], %170 {strides = array<i32>} : memref<2x8x64xf32, #tpu.memory_space<vmem>>, vector<2x1x64xf32>,
    %172 = vector.extract_strided_slice %85 {offsets = [0, 3, 0], sizes = [2, 1, 64], strides = [1, 1, 1]} : vector<2x8x64xf32> to vector<2x1x64xf32>
    %173 = vector.shape_cast %172 : vector<2x1x64xf32> to vector<2x64xf32>
    %174 = vector.shape_cast %173 : vector<2x64xf32> to vector<2x1x64xf32>
    %175 = vector.shape_cast %86 : vector<16x64xf32> to vector<1x16x64xf32>
    %176 = vector.broadcast %174 : vector<2x1x64xf32> to vector<2x16x64xf32>
    %177 = vector.broadcast %175 : vector<1x16x64xf32> to vector<2x16x64xf32>
    %178 = arith.mulf %176, %177 : vector<2x16x64xf32>
    %179 = math.exp %178 : vector<2x16x64xf32>
    %180 = vector.extract_strided_slice %62 {offsets = [0, 3, 0], sizes = [2, 1, 64], strides = [1, 1, 1]} : vector<2x8x64xf32> to vector<2x1x64xf32>
    %181 = vector.shape_cast %180 : vector<2x1x64xf32> to vector<2x64xf32>
    %182 = arith.mulf %173, %181 : vector<2x64xf32>
    %183 = vector.shape_cast %182 : vector<2x64xf32> to vector<2x1x64xf32>
    %184 = vector.extract_strided_slice %66 {offsets = [0, 3, 0], sizes = [2, 1, 16], strides = [1, 1, 1]} : vector<2x8x16xf32> to vector<2x1x16xf32>
    %185 = vector.shape_cast %184 : vector<2x1x16xf32> to vector<2x16xf32>
    %186 = vector.shape_cast %185 : vector<2x16xf32> to vector<2x16x1xf32>
    %187 = vector.broadcast %183 : vector<2x1x64xf32> to vector<2x16x64xf32>
    %188 = vector.broadcast %186 : vector<2x16x1xf32> to vector<2x16x64xf32>
    %189 = arith.mulf %187, %188 : vector<2x16x64xf32>
    %190 = arith.mulf %179, %163 : vector<2x16x64xf32>
    %191 = arith.addf %190, %189 : vector<2x16x64xf32>
    %192 = vector.extract_strided_slice %69 {offsets = [0, 3, 0], sizes = [2, 1, 16], strides = [1, 1, 1]} : vector<2x8x16xf32> to vector<2x1x16xf32>
    %193 = vector.shape_cast %192 : vector<2x1x16xf32> to vector<2x16xf32>
    %194 = vector.shape_cast %193 : vector<2x16xf32> to vector<2x16x1xf32>
    %195 = vector.broadcast %194 : vector<2x16x1xf32> to vector<2x16x64xf32>
    %196 = arith.mulf %191, %195 : vector<2x16x64xf32>
    %cst_75 = arith.constant dense<0.000000e+00> : vector<2x64xf32>
    %197 = vector.multi_reduction <add>, %196, %cst_75 [1] : vector<2x16x64xf32> to vector<2x64xf32>
    %198 = vector.shape_cast %197 : vector<2x64xf32> to vector<2x1x64xf32>
    %c0_76 = arith.constant 0 : index
    %c3_77 = arith.constant 3 : index
    %c0_78 = arith.constant 0 : index
    %199 = vector.load %arg22[%c0_76, %c3_77, %c0_78] : memref<2x8x64xf32, #tpu.memory_space<vmem>>, vector<2x1x64xf32>
    tpu.vector_store %arg22[%c0_76, %c3_77, %c0_78], %198 {strides = array<i32>} : memref<2x8x64xf32, #tpu.memory_space<vmem>>, vector<2x1x64xf32>,
    %200 = vector.extract_strided_slice %85 {offsets = [0, 4, 0], sizes = [2, 1, 64], strides = [1, 1, 1]} : vector<2x8x64xf32> to vector<2x1x64xf32>
    %201 = vector.shape_cast %200 : vector<2x1x64xf32> to vector<2x64xf32>
    %202 = vector.shape_cast %201 : vector<2x64xf32> to vector<2x1x64xf32>
    %203 = vector.shape_cast %86 : vector<16x64xf32> to vector<1x16x64xf32>
    %204 = vector.broadcast %202 : vector<2x1x64xf32> to vector<2x16x64xf32>
    %205 = vector.broadcast %203 : vector<1x16x64xf32> to vector<2x16x64xf32>
    %206 = arith.mulf %204, %205 : vector<2x16x64xf32>
    %207 = math.exp %206 : vector<2x16x64xf32>
    %208 = vector.extract_strided_slice %62 {offsets = [0, 4, 0], sizes = [2, 1, 64], strides = [1, 1, 1]} : vector<2x8x64xf32> to vector<2x1x64xf32>
    %209 = vector.shape_cast %208 : vector<2x1x64xf32> to vector<2x64xf32>
    %210 = arith.mulf %201, %209 : vector<2x64xf32>
    %211 = vector.shape_cast %210 : vector<2x64xf32> to vector<2x1x64xf32>
    %212 = vector.extract_strided_slice %66 {offsets = [0, 4, 0], sizes = [2, 1, 16], strides = [1, 1, 1]} : vector<2x8x16xf32> to vector<2x1x16xf32>
    %213 = vector.shape_cast %212 : vector<2x1x16xf32> to vector<2x16xf32>
    %214 = vector.shape_cast %213 : vector<2x16xf32> to vector<2x16x1xf32>
    %215 = vector.broadcast %211 : vector<2x1x64xf32> to vector<2x16x64xf32>
    %216 = vector.broadcast %214 : vector<2x16x1xf32> to vector<2x16x64xf32>
    %217 = arith.mulf %215, %216 : vector<2x16x64xf32>
    %218 = arith.mulf %207, %191 : vector<2x16x64xf32>
    %219 = arith.addf %218, %217 : vector<2x16x64xf32>
    %220 = vector.extract_strided_slice %69 {offsets = [0, 4, 0], sizes = [2, 1, 16], strides = [1, 1, 1]} : vector<2x8x16xf32> to vector<2x1x16xf32>
    %221 = vector.shape_cast %220 : vector<2x1x16xf32> to vector<2x16xf32>
    %222 = vector.shape_cast %221 : vector<2x16xf32> to vector<2x16x1xf32>
    %223 = vector.broadcast %222 : vector<2x16x1xf32> to vector<2x16x64xf32>
    %224 = arith.mulf %219, %223 : vector<2x16x64xf32>
    %cst_79 = arith.constant dense<0.000000e+00> : vector<2x64xf32>
    %225 = vector.multi_reduction <add>, %224, %cst_79 [1] : vector<2x16x64xf32> to vector<2x64xf32>
    %226 = vector.shape_cast %225 : vector<2x64xf32> to vector<2x1x64xf32>
    %c0_80 = arith.constant 0 : index
    %c4 = arith.constant 4 : index
    %c0_81 = arith.constant 0 : index
    %227 = vector.load %arg22[%c0_80, %c4, %c0_81] : memref<2x8x64xf32, #tpu.memory_space<vmem>>, vector<2x1x64xf32>
    tpu.vector_store %arg22[%c0_80, %c4, %c0_81], %226 {strides = array<i32>} : memref<2x8x64xf32, #tpu.memory_space<vmem>>, vector<2x1x64xf32>,
    %228 = vector.extract_strided_slice %85 {offsets = [0, 5, 0], sizes = [2, 1, 64], strides = [1, 1, 1]} : vector<2x8x64xf32> to vector<2x1x64xf32>
    %229 = vector.shape_cast %228 : vector<2x1x64xf32> to vector<2x64xf32>
    %230 = vector.shape_cast %229 : vector<2x64xf32> to vector<2x1x64xf32>
    %231 = vector.shape_cast %86 : vector<16x64xf32> to vector<1x16x64xf32>
    %232 = vector.broadcast %230 : vector<2x1x64xf32> to vector<2x16x64xf32>
    %233 = vector.broadcast %231 : vector<1x16x64xf32> to vector<2x16x64xf32>
    %234 = arith.mulf %232, %233 : vector<2x16x64xf32>
    %235 = math.exp %234 : vector<2x16x64xf32>
    %236 = vector.extract_strided_slice %62 {offsets = [0, 5, 0], sizes = [2, 1, 64], strides = [1, 1, 1]} : vector<2x8x64xf32> to vector<2x1x64xf32>
    %237 = vector.shape_cast %236 : vector<2x1x64xf32> to vector<2x64xf32>
    %238 = arith.mulf %229, %237 : vector<2x64xf32>
    %239 = vector.shape_cast %238 : vector<2x64xf32> to vector<2x1x64xf32>
    %240 = vector.extract_strided_slice %66 {offsets = [0, 5, 0], sizes = [2, 1, 16], strides = [1, 1, 1]} : vector<2x8x16xf32> to vector<2x1x16xf32>
    %241 = vector.shape_cast %240 : vector<2x1x16xf32> to vector<2x16xf32>
    %242 = vector.shape_cast %241 : vector<2x16xf32> to vector<2x16x1xf32>
    %243 = vector.broadcast %239 : vector<2x1x64xf32> to vector<2x16x64xf32>
    %244 = vector.broadcast %242 : vector<2x16x1xf32> to vector<2x16x64xf32>
    %245 = arith.mulf %243, %244 : vector<2x16x64xf32>
    %246 = arith.mulf %235, %219 : vector<2x16x64xf32>
    %247 = arith.addf %246, %245 : vector<2x16x64xf32>
    %248 = vector.extract_strided_slice %69 {offsets = [0, 5, 0], sizes = [2, 1, 16], strides = [1, 1, 1]} : vector<2x8x16xf32> to vector<2x1x16xf32>
    %249 = vector.shape_cast %248 : vector<2x1x16xf32> to vector<2x16xf32>
    %250 = vector.shape_cast %249 : vector<2x16xf32> to vector<2x16x1xf32>
    %251 = vector.broadcast %250 : vector<2x16x1xf32> to vector<2x16x64xf32>
    %252 = arith.mulf %247, %251 : vector<2x16x64xf32>
    %cst_82 = arith.constant dense<0.000000e+00> : vector<2x64xf32>
    %253 = vector.multi_reduction <add>, %252, %cst_82 [1] : vector<2x16x64xf32> to vector<2x64xf32>
    %254 = vector.shape_cast %253 : vector<2x64xf32> to vector<2x1x64xf32>
    %c0_83 = arith.constant 0 : index
    %c5 = arith.constant 5 : index
    %c0_84 = arith.constant 0 : index
    %255 = vector.load %arg22[%c0_83, %c5, %c0_84] : memref<2x8x64xf32, #tpu.memory_space<vmem>>, vector<2x1x64xf32>
    tpu.vector_store %arg22[%c0_83, %c5, %c0_84], %254 {strides = array<i32>} : memref<2x8x64xf32, #tpu.memory_space<vmem>>, vector<2x1x64xf32>,
    %256 = vector.extract_strided_slice %85 {offsets = [0, 6, 0], sizes = [2, 1, 64], strides = [1, 1, 1]} : vector<2x8x64xf32> to vector<2x1x64xf32>
    %257 = vector.shape_cast %256 : vector<2x1x64xf32> to vector<2x64xf32>
    %258 = vector.shape_cast %257 : vector<2x64xf32> to vector<2x1x64xf32>
    %259 = vector.shape_cast %86 : vector<16x64xf32> to vector<1x16x64xf32>
    %260 = vector.broadcast %258 : vector<2x1x64xf32> to vector<2x16x64xf32>
    %261 = vector.broadcast %259 : vector<1x16x64xf32> to vector<2x16x64xf32>
    %262 = arith.mulf %260, %261 : vector<2x16x64xf32>
    %263 = math.exp %262 : vector<2x16x64xf32>
    %264 = vector.extract_strided_slice %62 {offsets = [0, 6, 0], sizes = [2, 1, 64], strides = [1, 1, 1]} : vector<2x8x64xf32> to vector<2x1x64xf32>
    %265 = vector.shape_cast %264 : vector<2x1x64xf32> to vector<2x64xf32>
    %266 = arith.mulf %257, %265 : vector<2x64xf32>
    %267 = vector.shape_cast %266 : vector<2x64xf32> to vector<2x1x64xf32>
    %268 = vector.extract_strided_slice %66 {offsets = [0, 6, 0], sizes = [2, 1, 16], strides = [1, 1, 1]} : vector<2x8x16xf32> to vector<2x1x16xf32>
    %269 = vector.shape_cast %268 : vector<2x1x16xf32> to vector<2x16xf32>
    %270 = vector.shape_cast %269 : vector<2x16xf32> to vector<2x16x1xf32>
    %271 = vector.broadcast %267 : vector<2x1x64xf32> to vector<2x16x64xf32>
    %272 = vector.broadcast %270 : vector<2x16x1xf32> to vector<2x16x64xf32>
    %273 = arith.mulf %271, %272 : vector<2x16x64xf32>
    %274 = arith.mulf %263, %247 : vector<2x16x64xf32>
    %275 = arith.addf %274, %273 : vector<2x16x64xf32>
    %276 = vector.extract_strided_slice %69 {offsets = [0, 6, 0], sizes = [2, 1, 16], strides = [1, 1, 1]} : vector<2x8x16xf32> to vector<2x1x16xf32>
    %277 = vector.shape_cast %276 : vector<2x1x16xf32> to vector<2x16xf32>
    %278 = vector.shape_cast %277 : vector<2x16xf32> to vector<2x16x1xf32>
    %279 = vector.broadcast %278 : vector<2x16x1xf32> to vector<2x16x64xf32>
    %280 = arith.mulf %275, %279 : vector<2x16x64xf32>
    %cst_85 = arith.constant dense<0.000000e+00> : vector<2x64xf32>
    %281 = vector.multi_reduction <add>, %280, %cst_85 [1] : vector<2x16x64xf32> to vector<2x64xf32>
    %282 = vector.shape_cast %281 : vector<2x64xf32> to vector<2x1x64xf32>
    %c0_86 = arith.constant 0 : index
    %c6 = arith.constant 6 : index
    %c0_87 = arith.constant 0 : index
    %283 = vector.load %arg22[%c0_86, %c6, %c0_87] : memref<2x8x64xf32, #tpu.memory_space<vmem>>, vector<2x1x64xf32>
    tpu.vector_store %arg22[%c0_86, %c6, %c0_87], %282 {strides = array<i32>} : memref<2x8x64xf32, #tpu.memory_space<vmem>>, vector<2x1x64xf32>,
    %284 = vector.extract_strided_slice %85 {offsets = [0, 7, 0], sizes = [2, 1, 64], strides = [1, 1, 1]} : vector<2x8x64xf32> to vector<2x1x64xf32>
    %285 = vector.shape_cast %284 : vector<2x1x64xf32> to vector<2x64xf32>
    %286 = vector.shape_cast %285 : vector<2x64xf32> to vector<2x1x64xf32>
    %287 = vector.shape_cast %86 : vector<16x64xf32> to vector<1x16x64xf32>
    %288 = vector.broadcast %286 : vector<2x1x64xf32> to vector<2x16x64xf32>
    %289 = vector.broadcast %287 : vector<1x16x64xf32> to vector<2x16x64xf32>
    %290 = arith.mulf %288, %289 : vector<2x16x64xf32>
    %291 = math.exp %290 : vector<2x16x64xf32>
    %292 = vector.extract_strided_slice %62 {offsets = [0, 7, 0], sizes = [2, 1, 64], strides = [1, 1, 1]} : vector<2x8x64xf32> to vector<2x1x64xf32>
    %293 = vector.shape_cast %292 : vector<2x1x64xf32> to vector<2x64xf32>
    %294 = arith.mulf %285, %293 : vector<2x64xf32>
    %295 = vector.shape_cast %294 : vector<2x64xf32> to vector<2x1x64xf32>
    %296 = vector.extract_strided_slice %66 {offsets = [0, 7, 0], sizes = [2, 1, 16], strides = [1, 1, 1]} : vector<2x8x16xf32> to vector<2x1x16xf32>
    %297 = vector.shape_cast %296 : vector<2x1x16xf32> to vector<2x16xf32>
    %298 = vector.shape_cast %297 : vector<2x16xf32> to vector<2x16x1xf32>
    %299 = vector.broadcast %295 : vector<2x1x64xf32> to vector<2x16x64xf32>
    %300 = vector.broadcast %298 : vector<2x16x1xf32> to vector<2x16x64xf32>
    %301 = arith.mulf %299, %300 : vector<2x16x64xf32>
    %302 = arith.mulf %291, %275 : vector<2x16x64xf32>
    %303 = arith.addf %302, %301 : vector<2x16x64xf32>
    %304 = vector.extract_strided_slice %69 {offsets = [0, 7, 0], sizes = [2, 1, 16], strides = [1, 1, 1]} : vector<2x8x16xf32> to vector<2x1x16xf32>
    %305 = vector.shape_cast %304 : vector<2x1x16xf32> to vector<2x16xf32>
    %306 = vector.shape_cast %305 : vector<2x16xf32> to vector<2x16x1xf32>
    %307 = vector.broadcast %306 : vector<2x16x1xf32> to vector<2x16x64xf32>
    %308 = arith.mulf %303, %307 : vector<2x16x64xf32>
    %cst_88 = arith.constant dense<0.000000e+00> : vector<2x64xf32>
    %309 = vector.multi_reduction <add>, %308, %cst_88 [1] : vector<2x16x64xf32> to vector<2x64xf32>
    %310 = vector.shape_cast %309 : vector<2x64xf32> to vector<2x1x64xf32>
    %c0_89 = arith.constant 0 : index
    %c7 = arith.constant 7 : index
    %c0_90 = arith.constant 0 : index
    %311 = vector.load %arg22[%c0_89, %c7, %c0_90] : memref<2x8x64xf32, #tpu.memory_space<vmem>>, vector<2x1x64xf32>
    tpu.vector_store %arg22[%c0_89, %c7, %c0_90], %310 {strides = array<i32>} : memref<2x8x64xf32, #tpu.memory_space<vmem>>, vector<2x1x64xf32>,
    %c0_91 = arith.constant 0 : index
    %c0_92 = arith.constant 0 : index
    %c0_93 = arith.constant 0 : index
    %312 = vector.load %arg22[%c0_91, %c0_92, %c0_93] : memref<2x8x64xf32, #tpu.memory_space<vmem>>, vector<2x8x64xf32>
    %c0_94 = arith.constant 0 : index
    %c0_95 = arith.constant 0 : index
    %313 = vector.load %arg12[%c0_94, %c0_95] : memref<1x64xf32, #tpu.memory_space<vmem>>, vector<1x64xf32>
    %314 = vector.shape_cast %313 : vector<1x64xf32> to vector<1x1x64xf32>
    %315 = vector.broadcast %314 : vector<1x1x64xf32> to vector<2x8x64xf32>
    %316 = arith.mulf %62, %315 : vector<2x8x64xf32>
    %317 = arith.addf %312, %316 : vector<2x8x64xf32>
    %318 = vector.shape_cast %317 : vector<2x8x64xf32> to vector<16x64xf32>
    %cst_96 = arith.constant 0.000000e+00 : f32
    %319 = vector.broadcast %cst_96 : f32 to vector<16x64xf32>
    %320 = arith.subf %319, %19 : vector<16x64xf32>
    %321 = math.exp %320 : vector<16x64xf32>
    %cst_97 = arith.constant 1.000000e+00 : f32
    %322 = vector.broadcast %cst_97 : f32 to vector<16x64xf32>
    %323 = arith.addf %322, %321 : vector<16x64xf32>
    %cst_98 = arith.constant 1.000000e+00 : f32
    %324 = vector.broadcast %cst_98 : f32 to vector<16x64xf32>
    %325 = arith.divf %324, %323 : vector<16x64xf32>
    %326 = arith.mulf %19, %325 : vector<16x64xf32>
    %327 = arith.mulf %318, %326 : vector<16x64xf32>
    %c0_99 = arith.constant 0 : index
    %c0_100 = arith.constant 0 : index
    %328 = vector.load %arg13[%c0_99, %c0_100] : memref<64x32xf32, #tpu.memory_space<vmem>>, vector<64x32xf32>
    %cst_101 = arith.constant dense<0.000000e+00> : vector<16x32xf32>
    %329 = tpu.matmul %327, %328, %cst_101 {dimension_numbers = #tpu.dot_dimension_numbers<[1], [0], [0], [1], [0, 0, 1, 1], [], []>} : vector<16x64xf32>, vector<64x32xf32>, vector<16x32xf32> -> vector<16x32xf32>
    %330 = vector.shape_cast %0 : vector<2x8x32xf32> to vector<16x32xf32>
    %331 = arith.addf %330, %329 : vector<16x32xf32>
    %cst_102 = arith.constant dense<0.000000e+00> : vector<16xf32>
    %332 = vector.multi_reduction <add>, %331, %cst_102 [1] : vector<16x32xf32> to vector<16xf32>
    %333 = vector.shape_cast %332 : vector<16xf32> to vector<16x1xf32>
    %cst_103 = arith.constant 3.200000e+01 : f32
    %334 = vector.broadcast %cst_103 : f32 to vector<16x1xf32>
    %335 = arith.divf %333, %334 : vector<16x1xf32>
    %336 = vector.broadcast %335 : vector<16x1xf32> to vector<16x32xf32>
    %337 = arith.subf %331, %336 : vector<16x32xf32>
    %338 = arith.mulf %337, %337 : vector<16x32xf32>
    %cst_104 = arith.constant dense<0.000000e+00> : vector<16xf32>
    %339 = vector.multi_reduction <add>, %338, %cst_104 [1] : vector<16x32xf32> to vector<16xf32>
    %340 = vector.shape_cast %339 : vector<16xf32> to vector<16x1xf32>
    %cst_105 = arith.constant 3.200000e+01 : f32
    %341 = vector.broadcast %cst_105 : f32 to vector<16x1xf32>
    %342 = arith.divf %340, %341 : vector<16x1xf32>
    %343 = vector.broadcast %335 : vector<16x1xf32> to vector<16x32xf32>
    %344 = arith.subf %331, %343 : vector<16x32xf32>
    %cst_106 = arith.constant 9.99999974E-6 : f32
    %345 = vector.broadcast %cst_106 : f32 to vector<16x1xf32>
    %346 = arith.addf %342, %345 : vector<16x1xf32>
    %347 = math.rsqrt %346 : vector<16x1xf32>
    %348 = vector.broadcast %347 : vector<16x1xf32> to vector<16x32xf32>
    %349 = arith.mulf %344, %348 : vector<16x32xf32>
    %c0_107 = arith.constant 0 : index
    %c0_108 = arith.constant 0 : index
    %350 = vector.load %arg14[%c0_107, %c0_108] : memref<1x32xf32, #tpu.memory_space<vmem>>, vector<1x32xf32>
    %351 = vector.broadcast %350 : vector<1x32xf32> to vector<16x32xf32>
    %352 = arith.mulf %349, %351 : vector<16x32xf32>
    %c0_109 = arith.constant 0 : index
    %c0_110 = arith.constant 0 : index
    %353 = vector.load %arg15[%c0_109, %c0_110] : memref<1x32xf32, #tpu.memory_space<vmem>>, vector<1x32xf32>
    %354 = vector.broadcast %353 : vector<1x32xf32> to vector<16x32xf32>
    %355 = arith.addf %352, %354 : vector<16x32xf32>
    %c0_111 = arith.constant 0 : index
    %c0_112 = arith.constant 0 : index
    %356 = vector.load %arg16[%c0_111, %c0_112] : memref<32x128xf32, #tpu.memory_space<vmem>>, vector<32x128xf32>
    %cst_113 = arith.constant dense<0.000000e+00> : vector<16x128xf32>
    %357 = tpu.matmul %355, %356, %cst_113 {dimension_numbers = #tpu.dot_dimension_numbers<[1], [0], [0], [1], [0, 0, 1, 1], [], []>} : vector<16x32xf32>, vector<32x128xf32>, vector<16x128xf32> -> vector<16x128xf32>
    %c0_114 = arith.constant 0 : index
    %c0_115 = arith.constant 0 : index
    %358 = vector.load %arg17[%c0_114, %c0_115] : memref<1x128xf32, #tpu.memory_space<vmem>>, vector<1x128xf32>
    %359 = vector.broadcast %358 : vector<1x128xf32> to vector<16x128xf32>
    %360 = arith.addf %357, %359 : vector<16x128xf32>
    %cst_116 = arith.constant 5.000000e-01 : f32
    %361 = vector.broadcast %cst_116 : f32 to vector<16x128xf32>
    %362 = arith.mulf %361, %360 : vector<16x128xf32>
    %cst_117 = arith.constant 0.707106769 : f32
    %363 = vector.broadcast %cst_117 : f32 to vector<16x128xf32>
    %364 = arith.mulf %360, %363 : vector<16x128xf32>
    %365 = math.erf %364 : vector<16x128xf32>
    %cst_118 = arith.constant 1.000000e+00 : f32
    %366 = vector.broadcast %cst_118 : f32 to vector<16x128xf32>
    %367 = arith.addf %366, %365 : vector<16x128xf32>
    %368 = arith.mulf %362, %367 : vector<16x128xf32>
    %c0_119 = arith.constant 0 : index
    %c0_120 = arith.constant 0 : index
    %369 = vector.load %arg18[%c0_119, %c0_120] : memref<128x32xf32, #tpu.memory_space<vmem>>, vector<128x32xf32>
    %cst_121 = arith.constant dense<0.000000e+00> : vector<16x32xf32>
    %370 = tpu.matmul %368, %369, %cst_121 {dimension_numbers = #tpu.dot_dimension_numbers<[1], [0], [0], [1], [0, 0, 1, 1], [], []>} : vector<16x128xf32>, vector<128x32xf32>, vector<16x32xf32> -> vector<16x32xf32>
    %c0_122 = arith.constant 0 : index
    %c0_123 = arith.constant 0 : index
    %371 = vector.load %arg19[%c0_122, %c0_123] : memref<1x32xf32, #tpu.memory_space<vmem>>, vector<1x32xf32>
    %372 = vector.broadcast %371 : vector<1x32xf32> to vector<16x32xf32>
    %373 = arith.addf %370, %372 : vector<16x32xf32>
    %374 = arith.addf %331, %373 : vector<16x32xf32>
    %375 = vector.shape_cast %374 : vector<16x32xf32> to vector<2x8x32xf32>
    %c0_124 = arith.constant 0 : index
    %c0_125 = arith.constant 0 : index
    %c0_126 = arith.constant 0 : index
    %376 = vector.load %arg20[%c0_124, %c0_125, %c0_126] : memref<2x8x32xf32, #tpu.memory_space<vmem>>, vector<2x8x32xf32>
    tpu.vector_store %arg20[%c0_124, %c0_125, %c0_126], %375 {strides = array<i32>} : memref<2x8x32xf32, #tpu.memory_space<vmem>>, vector<2x8x32xf32>,
    return
  }
  func.func @transform_0(%arg0: i32) -> (i32, i32, i32) {
    %c0_i32 = arith.constant 0 : i32
    %c0_i32_0 = arith.constant 0 : i32
    %c0_i32_1 = arith.constant 0 : i32
    %c0_i32_2 = arith.constant 0 : i32
    return %c0_i32, %c0_i32_0, %c0_i32_1 : i32, i32, i32
  }
  func.func @transform_1(%arg0: i32) -> (i32, i32) {
    %c0_i32 = arith.constant 0 : i32
    %c0_i32_0 = arith.constant 0 : i32
    %c0_i32_1 = arith.constant 0 : i32
    return %c0_i32, %c0_i32_0 : i32, i32
  }
  func.func @transform_2(%arg0: i32) -> (i32, i32) {
    %c0_i32 = arith.constant 0 : i32
    %c0_i32_0 = arith.constant 0 : i32
    %c0_i32_1 = arith.constant 0 : i32
    return %c0_i32, %c0_i32_0 : i32, i32
  }
  func.func @transform_3(%arg0: i32) -> (i32, i32) {
    %c0_i32 = arith.constant 0 : i32
    %c0_i32_0 = arith.constant 0 : i32
    %c0_i32_1 = arith.constant 0 : i32
    return %c0_i32, %c0_i32_0 : i32, i32
  }
  func.func @transform_4(%arg0: i32) -> (i32, i32) {
    %c0_i32 = arith.constant 0 : i32
    %c0_i32_0 = arith.constant 0 : i32
    %c0_i32_1 = arith.constant 0 : i32
    return %c0_i32, %c0_i32_0 : i32, i32
  }
  func.func @transform_5(%arg0: i32) -> (i32, i32) {
    %c0_i32 = arith.constant 0 : i32
    %c0_i32_0 = arith.constant 0 : i32
    %c0_i32_1 = arith.constant 0 : i32
    return %c0_i32, %c0_i32_0 : i32, i32
  }
  func.func @transform_6(%arg0: i32) -> (i32, i32) {
    %c0_i32 = arith.constant 0 : i32
    %c0_i32_0 = arith.constant 0 : i32
    %c0_i32_1 = arith.constant 0 : i32
    return %c0_i32, %c0_i32_0 : i32, i32
  }
  func.func @transform_7(%arg0: i32) -> (i32, i32) {
    %c0_i32 = arith.constant 0 : i32
    %c0_i32_0 = arith.constant 0 : i32
    %c0_i32_1 = arith.constant 0 : i32
    return %c0_i32, %c0_i32_0 : i32, i32
  }
  func.func @transform_8(%arg0: i32) -> (i32, i32) {
    %c0_i32 = arith.constant 0 : i32
    %c0_i32_0 = arith.constant 0 : i32
    %c0_i32_1 = arith.constant 0 : i32
    return %c0_i32, %c0_i32_0 : i32, i32
  }
  func.func @transform_9(%arg0: i32) -> (i32, i32) {
    %c0_i32 = arith.constant 0 : i32
    %c0_i32_0 = arith.constant 0 : i32
    %c0_i32_1 = arith.constant 0 : i32
    return %c0_i32, %c0_i32_0 : i32, i32
  }
  func.func @transform_10(%arg0: i32) -> (i32, i32) {
    %c0_i32 = arith.constant 0 : i32
    %c0_i32_0 = arith.constant 0 : i32
    %c0_i32_1 = arith.constant 0 : i32
    return %c0_i32, %c0_i32_0 : i32, i32
  }
  func.func @transform_11(%arg0: i32) -> (i32, i32) {
    %c0_i32 = arith.constant 0 : i32
    %c0_i32_0 = arith.constant 0 : i32
    %c0_i32_1 = arith.constant 0 : i32
    return %c0_i32, %c0_i32_0 : i32, i32
  }
  func.func @transform_12(%arg0: i32) -> (i32, i32) {
    %c0_i32 = arith.constant 0 : i32
    %c0_i32_0 = arith.constant 0 : i32
    %c0_i32_1 = arith.constant 0 : i32
    return %c0_i32, %c0_i32_0 : i32, i32
  }
  func.func @transform_13(%arg0: i32) -> (i32, i32) {
    %c0_i32 = arith.constant 0 : i32
    %c0_i32_0 = arith.constant 0 : i32
    %c0_i32_1 = arith.constant 0 : i32
    return %c0_i32, %c0_i32_0 : i32, i32
  }
  func.func @transform_14(%arg0: i32) -> (i32, i32) {
    %c0_i32 = arith.constant 0 : i32
    %c0_i32_0 = arith.constant 0 : i32
    %c0_i32_1 = arith.constant 0 : i32
    return %c0_i32, %c0_i32_0 : i32, i32
  }
  func.func @transform_15(%arg0: i32) -> (i32, i32) {
    %c0_i32 = arith.constant 0 : i32
    %c0_i32_0 = arith.constant 0 : i32
    %c0_i32_1 = arith.constant 0 : i32
    return %c0_i32, %c0_i32_0 : i32, i32
  }
  func.func @transform_16(%arg0: i32) -> (i32, i32) {
    %c0_i32 = arith.constant 0 : i32
    %c0_i32_0 = arith.constant 0 : i32
    %c0_i32_1 = arith.constant 0 : i32
    return %c0_i32, %c0_i32_0 : i32, i32
  }
  func.func @transform_17(%arg0: i32) -> (i32, i32) {
    %c0_i32 = arith.constant 0 : i32
    %c0_i32_0 = arith.constant 0 : i32
    %c0_i32_1 = arith.constant 0 : i32
    return %c0_i32, %c0_i32_0 : i32, i32
  }
  func.func @transform_18(%arg0: i32) -> (i32, i32) {
    %c0_i32 = arith.constant 0 : i32
    %c0_i32_0 = arith.constant 0 : i32
    %c0_i32_1 = arith.constant 0 : i32
    return %c0_i32, %c0_i32_0 : i32, i32
  }
  func.func @transform_19(%arg0: i32) -> (i32, i32, i32) {
    %c0_i32 = arith.constant 0 : i32
    %c0_i32_0 = arith.constant 0 : i32
    %c0_i32_1 = arith.constant 0 : i32
    %c0_i32_2 = arith.constant 0 : i32
    return %c0_i32, %c0_i32_0, %c0_i32_1 : i32, i32, i32
  }
}

</mosaic_0001>

<bundles_post_ra>
// kernel: block_forward.1
= control target key start
LH: loop header
LB: loop body
LE: loop exit
PB: predicated region body
PF: predicated region fallthrough
CT: control target
= control target key end

     0   :  { %s3085_s0 = inlined_call_operand.vmem [shape: f32[2,8,32], index: 0, kind: input, shape index: {}]   ;;  %s3086_s1 = inlined_call_operand.vmem [shape: f32[1,32], index: 1, kind: input, shape index: {}]   ;;  %s3087_s2 = inlined_call_operand.vmem [shape: f32[32,64], index: 2, kind: input, shape index: {}]   ;;  %s3088_s3 = inlined_call_operand.vmem [shape: f32[32,64], index: 3, kind: input, shape index: {}]   ;;  %s3089_s4 = inlined_call_operand.vmem [shape: f32[4,64], index: 4, kind: input, shape index: {}]   ;;  %s3090_s5 = inlined_call_operand.vmem [shape: f32[1,64], index: 5, kind: input, shape index: {}]   ;;  %s3091_s6 = inlined_call_operand.vmem [shape: f32[64,64], index: 6, kind: input, shape index: {}]   ;;  %s3092_s7 = inlined_call_operand.vmem [shape: f32[1,64], index: 7, kind: input, shape index: {}]   ;;  %s3093_s8 = inlined_call_operand.vmem [shape: f32[64,16], index: 8, kind: input, shape index: {}]   ;;  %s3094_s9 = inlined_call_operand.vmem [shape: f32[64,16], index: 9, kind: input, shape index: {}]   ;;  %s3095_s10 = inlined_call_operand.vmem [shape: f32[16,64], index: 10, kind: input, shape index: {}]   ;;  %s3096_s11 = inlined_call_operand.vmem [shape: f32[1,64], index: 11, kind: input, shape index: {}]   ;;  %s3097_s12 = inlined_call_operand.vmem [shape: f32[64,32], index: 12, kind: input, shape index: {}]   ;;  %s3098_s13 = inlined_call_operand.vmem [shape: f32[1,32], index: 13, kind: input, shape index: {}]   ;;  %s3099_s14 = inlined_call_operand.vmem [shape: f32[1,32], index: 14, kind: input, shape index: {}]   ;;  %s3100_s15 = inlined_call_operand.vmem [shape: f32[32,128], index: 15, kind: input, shape index: {}]   ;;  %s3101_s16 = inlined_call_operand.vmem [shape: f32[1,128], index: 16, kind: input, shape index: {}]   ;;  %s3102_s17 = inlined_call_operand.vmem [shape: f32[128,32], index: 17, kind: input, shape index: {}]   ;;  %s3103_s18 = inlined_call_operand.vmem [shape: f32[1,32], index: 18, kind: input, shape index: {}]   ;;  %s3104_s19 = inlined_call_operand.hbm [shape: f32[2,8,32], index: 19, kind: output, shape index: {}]  }
   0x1   :  { %3108 = sst [smem:[#allocation7_spill]] %s3085_s0 }
   0x2   :  { %3109 = sst [smem:[#allocation8_spill]] %s3086_s1 }
   0x3   :  { %3110 = sst [smem:[#allocation9_spill]] %s3087_s2 }
   0x4   :  { %3111 = sst [smem:[#allocation10_spill]] %s3088_s3 }
   0x5   :  { %s3112_s20 = sld [smem:[#allocation7_spill]]  ;;  %vm67_vm0 = vcmask 261120  }
   0xb   :  { %v63_v0 = vld [vmem:[%s3112_s20] sm:$0xff]  ;;  %v64_v1 = vld [vmem:[%s3112_s20 + $0x8] sm:$0xff] }
   0xc   :  { %24 = vsyncpa [#allocation5], 0  ;;  %v65_v2 = vmul.f32 %v63_v0, %v63_v0  ;;  %v66_v3 = vmul.f32 %v64_v1, %v64_v1  ;;  %s3113_s23 = sld [smem:[#allocation9_spill]]  ;;  %v340_v27 = vld [vmem:[%s3093_s8 + $0x38] sm:$0xff]  ;;  %v339_v29 = vld [vmem:[%s3093_s8 + $0x30] sm:$0xff]  ;;  %vm272_vm1 = vcmask 523264  }
   0xd   :  { %s3114_s30 = sld [smem:[#allocation10_spill]]  ;;  %v429_v28 = vld [vmem:[%s3094_s9 + $0x38] sm:$0xff]  ;;  %v428_v30 = vld [vmem:[%s3094_s9 + $0x30] sm:$0xff]  ;;  %v338_v31 = vld [vmem:[%s3093_s8 + $0x28] sm:$0xff]  ;;  %vm286_vm2 = vcmask 522240   ;;  %vm300_vm3 = vcmask 521216  }
   0xe   :  { %v68_v4 = vsel %vm67_vm0, %v65_v2, 0.0  ;;  %v71_v5 = vsel %vm67_vm0, %v66_v3, 0.0  ;;  %s3115_s22 = sld [smem:[#allocation8_spill]]  ;;  %2009 = vmatprep.subr.mxu1 %v429_v28  ;;  %v427_v32 = vld [vmem:[%s3094_s9 + $0x28] sm:$0xff]  ;;  %v337_v33 = vld [vmem:[%s3093_s8 + $0x20] sm:$0xff]  ;;  %v336_v35 = vld [vmem:[%s3093_s8 + $0x18] sm:$0xff] }
   0xf   :  { %69 = vadd.xlane.f32.xlu0 %v68_v4  ;;  %2010 = vmatpush3.msra.mxu1 %v429_v28  ;;  %v426_v34 = vld [vmem:[%s3094_s9 + $0x20] sm:$0xff]  ;;  %v425_v36 = vld [vmem:[%s3094_s9 + $0x18] sm:$0xff]  ;;  %v335_v37 = vld [vmem:[%s3093_s8 + $0x10] sm:$0xff]  ;;  %vm314_vm4 = vcmask 520192   ;;  %vm723_vm5 = vcmask 516096  }
  0x10   :  { %2011 = vmatprep.subr.mxu1 %v428_v30  ;;  %v424_v38 = vld [vmem:[%s3094_s9 + $0x10] sm:$0xff]  ;;  %v334_v39 = vld [vmem:[%s3093_s8 + $0x8] sm:$0xff]  ;;  %v333_v41 = vld [vmem:[%s3093_s8] sm:$0xff] }
  0x11   :  { %2012 = vmatpush3.msra.mxu1 %v428_v30  ;;  %v423_v40 = vld [vmem:[%s3094_s9 + $0x8] sm:$0xff]  ;;  %v422_v42 = vld [vmem:[%s3094_s9] sm:$0xff]  ;;  %v2432_v43 = vld [vmem:[%s3091_s6 + $0x38] sm:$0xff]  ;;  %v615_v30 = vlaneseq }
  0x12   :  { %v95_v6 = vld [vmem:[%s3113_s23 + $0x18] sm:$0xff]  ;;  %v94_v7 = vld [vmem:[%s3113_s23 + $0x10] sm:$0xff]  ;;  %v93_v8 = vld [vmem:[%s3113_s23 + $0x8] sm:$0xff]  ;;  %2013 = vmatprep.subr.mxu1 %v427_v32 }
  0x13   :  { %72 = vadd.xlane.f32.xlu0 %v71_v5  ;;  %1968 = vmatprep.subr.mxu0 %v95_v6  ;;  %v92_v9 = vld [vmem:[%s3113_s23] sm:$0xff]  ;;  %v180_v10 = vld [vmem:[%s3114_s30 + $0x18] sm:$0xff]  ;;  %v179_v24 = vld [vmem:[%s3114_s30 + $0x10] sm:$0xff] }
  0x14   :  { %1969 = vmatpush3.msra.mxu0 %v95_v6  ;;  %v1866_v18 = vld [vmem:[%s3115_s22] ss:$0 sm:$0xff]  ;;  %v178_v25 = vld [vmem:[%s3114_s30 + $0x8] sm:$0xff]  ;;  %2014 = vmatpush3.msra.mxu1 %v427_v32  ;;  %v1871_v44 = vld [vmem:[%s3089_s4 + $0x3] ss:$0 sm:$0xff] }
  0x15   :  { %1970 = vmatprep.subr.mxu0 %v94_v7  ;;  %v177_v26 = vld [vmem:[%s3114_s30] sm:$0xff]  ;;  %2015 = vmatprep.subr.mxu1 %v426_v34  ;;  %v506_v28 = vld [vmem:[%s3091_s6 + $0x8] sm:$0xff] }
  0x16   :  { %1971 = vmatpush3.msra.mxu0 %v94_v7  ;;  %2016 = vmatpush3.msra.mxu1 %v426_v34  ;;  %v1872_v46 = vld [vmem:[%s3090_s5] ss:$0 sm:$0xff]  ;;  %v1873_v52 = vld [vmem:[%s3089_s4 + $0x2] ss:$0 sm:$0xff]  ;;  %v1874_v59 = vld [vmem:[%s3089_s4 + $0x1] ss:$0 sm:$0xff] }
  0x17   :  { %1972 = vmatprep.subr.mxu0 %v93_v8  ;;  %2017 = vmatprep.subr.mxu1 %v425_v36  ;;  %v1875_v2 = vld [vmem:[%s3089_s4] ss:$0 sm:$0xff] }
  0x18   :  { %1973 = vmatpush3.msra.mxu0 %v93_v8  ;;  %2018 = vmatpush3.msra.mxu1 %v425_v36 }
  0x19   :  { %1974 = vmatprep.subr.mxu0 %v92_v9  ;;  %2019 = vmatprep.subr.mxu1 %v424_v38 }
  0x1a   :  { %1975 = vmatpush3.msra.mxu0 %v92_v9  ;;  %2020 = vmatpush3.msra.mxu1 %v424_v38 }
  0x1b   :  { %1979 = vmatprep.subr.mxu0 %v180_v10  ;;  %2021 = vmatprep.subr.mxu1 %v423_v40 }
  0x1c   :  { %2022 = vmatpush3.msra.mxu1 %v423_v40 }
  0x1d   :  { %2023 = vmatprep.subr.mxu1 %v422_v42 }
  0x1e   :  { %2024 = vmatpush3.msra.mxu1 %v422_v42 }
  0x98   :  { %v70_v11 = vpop.xlane.xlu0 %69 }
  0x99   :  { %v75_v12 = vmul.f32 0.03125, %v70_v11 }
  0x9b   :  { %v77_v13 = vadd.f32 1e-05, %v75_v12 }
  0x9c   :  { %v73_v14 = vpop.xlane.xlu0 %72 }
  0x9d   :  { %2115 = vrsqrt.f32 %v77_v13  ;;  %v76_v15 = vmul.f32 0.03125, %v73_v14 }
  0x9f   :  { %v78_v16 = vadd.f32 1e-05, %v76_v15 }
  0xa1   :  { %2117 = vrsqrt.f32 %v78_v16 }
  0xaa   :  { %v2116_v17 = vpop.eup %2115 }
  0xab   :  { %v81_v19 = vmul.f32 %v2116_v17, %v63_v0 }
  0xad   :  { %v90_v20 = vmul.f32 %v1866_v18, %v81_v19 }
  0xae   :  { %v2118_v21 = vpop.eup %2117 }
  0xaf   :  { %v82_v22 = vmul.f32 %v2118_v21, %v64_v1  ;;  %1976 = vmatprep.mubr.msk.f32.mxu0 %vm67_vm0, %v90_v20 }
  0xb1   :  { %v91_v23 = vmul.f32 %v1866_v18, %v82_v22 }
  0xb3   :  { %1977 = vmatmul.mubr.msk.f32.vlgmr.msra.gmra.mxu0 %vm67_vm0, %v91_v23 }
  0xb4   :  { %1980 = vmatpush3.msra.mxu0 %v180_v10  ;;  %1987 = vmatprep.mubr.msk.f32.mxu0 %vm67_vm0, %v90_v20 }
  0xb5   :  { %1981 = vmatprep.subr.mxu0 %v179_v24 }
  0xb6   :  { %1982 = vmatpush3.msra.mxu0 %v179_v24  ;;  %v510_v24 = vld [vmem:[%s3091_s6 + $0x28] sm:$0xff] }
  0xb7   :  { %1983 = vmatprep.subr.mxu0 %v178_v25 }
  0xb8   :  { %1984 = vmatpush3.msra.mxu0 %v178_v25  ;;  %v509_v25 = vld [vmem:[%s3091_s6 + $0x20] sm:$0xff] }
  0xb9   :  { %1985 = vmatprep.subr.mxu0 %v177_v26 }
  0xba   :  { %1986 = vmatpush3.msra.mxu0 %v177_v26  ;;  %v508_v26 = vld [vmem:[%s3091_s6 + $0x18] sm:$0xff] }
  0xbb   :  { %1988 = vmatmul.mubr.msk.f32.vlgmr.msra.gmra.mxu0 %vm67_vm0, %v91_v23  ;;  %1990 = vmatprep.subr.mxu0 %v340_v27  ;;  %v511_v23 = vld [vmem:[%s3091_s6 + $0x30] sm:$0xff] }
  0xbc   :  { %1991 = vmatpush3.msra.mxu0 %v340_v27  ;;  %v507_v27 = vld [vmem:[%s3091_s6 + $0x10] sm:$0xff] }
  0xbd   :  { %1992 = vmatprep.subr.mxu0 %v339_v29 }
  0xbe   :  { %1993 = vmatpush3.msra.mxu0 %v339_v29  ;;  %v505_v29 = vld [vmem:[%s3091_s6] sm:$0xff] }
  0xbf   :  { %1994 = vmatprep.subr.mxu0 %v338_v31 }
  0xc0   :  { %1995 = vmatpush3.msra.mxu0 %v338_v31  ;;  %v616_v31 = vshrl.u32 %v615_v30, 7  ;;  %v2569_v30 = vld [vmem:[%s3095_s10 + $0x8] sm:$0xff] }
  0xc1   :  { %1996 = vmatprep.subr.mxu0 %v337_v33 }
  0xc2   :  { %1997 = vmatpush3.msra.mxu0 %v337_v33  ;;  %v2492_v33 = vsub.s32 0, %v616_v31  ;;  %v2499_v38 = vsub.s32 2, %v616_v31 }
  0xc3   :  { %1998 = vmatprep.subr.mxu0 %v336_v35 }
  0xc4   :  { %1999 = vmatpush3.msra.mxu0 %v336_v35 }
  0xc5   :  { %2000 = vmatprep.subr.mxu0 %v335_v37 }
  0xc6   :  { %2001 = vmatpush3.msra.mxu0 %v335_v37  ;;  %v2497_v37 = vsub.s32 1, %v616_v31 }
  0xc7   :  { %2002 = vmatprep.subr.mxu0 %v334_v39 }
  0xc8   :  { %2003 = vmatpush3.msra.mxu0 %v334_v39 }
  0xc9   :  { %2004 = vmatprep.subr.mxu0 %v333_v41 }
  0xca   :  { %2005 = vmatpush3.msra.mxu0 %v333_v41  ;;  %v2503_v41 = vsub.s32 3, %v616_v31 }
  0xcb   :  { %2028 = vmatprep.subr.mxu0 %v2432_v43 }
 0x173   :  { %v1978_v45 = vpop.f32.mrf.mxu0 }
 0x174   :  { %v262_v47 = vmul.f32 %v1978_v45, %v1871_v44  ;;  %v283_v53 = vmul.f32 %v1978_v45, %v1873_v52  ;;  %v297_v60 = vmul.f32 %v1978_v45, %v1874_v59  ;;  %v311_v3 = vmul.f32 %v1978_v45, %v1875_v2 }
 0x175   :  { %v168_v48 = vpop.f32.mrf.mxu0  ;;  %v2509_v45 = vsub.s32 5, %v616_v31 }
 0x176   :  { %v271_v49 = vadd.f32 %v1872_v46, %v262_v47  ;;  %v261_v50 = vmul.f32 %v1871_v44, %v168_v48  ;;  %v282_v56 = vmul.f32 %v1873_v52, %v168_v48  ;;  %v296_v63 = vmul.f32 %v1874_v59, %v168_v48 }
 0x177   :  { %v310_v6 = vmul.f32 %v1875_v2, %v168_v48 }
 0x178   :  { %274 = vst.msk [vmem:[#allocation2 + $0x8] sm:$0xff] %vm272_vm1, %v271_v49  ;;  %v270_v51 = vadd.f32 %v1872_v46, %v261_v50  ;;  %v2514_v49 = vsub.s32 6, %v616_v31  ;;  %v1880_v50 = vld [vmem:[%s3092_s7] ss:$0 sm:$0xff] }
 0x17a   :  { %273 = vst.msk [vmem:[#allocation2] sm:$0xff] %vm272_vm1, %v270_v51 }
 0x17b   :  { %v2490_v32 = vpop.f32.mrf.mxu0 }
 0x17d   :  { %v2494_v34 = vpop.f32.mrf.mxu0 }
 0x17f   :  { %v276_v54 = vld [vmem:[#allocation2 + $0x9] sm:$0x7f] }
 0x180   :  { %v285_v55 = vadd.f32 %v283_v53, %v276_v54 }
 0x181   :  { %v275_v57 = vld [vmem:[#allocation2 + $0x1] sm:$0x7f] }
 0x182   :  { %288 = vst.msk [vmem:[#allocation2 + $0x9] sm:$0x7f] %vm286_vm2, %v285_v55  ;;  %v284_v58 = vadd.f32 %v282_v56, %v275_v57  ;;  %v2520_v55 = vsub.s32 7, %v616_v31 }
 0x184   :  { %287 = vst.msk [vmem:[#allocation2 + $0x1] sm:$0x7f] %vm286_vm2, %v284_v58 }
 0x189   :  { %v290_v61 = vld [vmem:[#allocation2 + $0xa] sm:$0x3f] }
 0x18a   :  { %v299_v62 = vadd.f32 %v297_v60, %v290_v61 }
 0x18b   :  { %v289_v0 = vld [vmem:[#allocation2 + $0x2] sm:$0x3f] }
 0x18c   :  { %302 = vst.msk [vmem:[#allocation2 + $0xa] sm:$0x3f] %vm300_vm3, %v299_v62  ;;  %v298_v1 = vadd.f32 %v296_v63, %v289_v0 }
 0x18e   :  { %301 = vst.msk [vmem:[#allocation2 + $0x2] sm:$0x3f] %vm300_vm3, %v298_v1 }
 0x193   :  { %v304_v4 = vld [vmem:[#allocation2 + $0xb] sm:$0x1f] }
 0x194   :  { %v313_v5 = vadd.f32 %v311_v3, %v304_v4 }
 0x195   :  { %v303_v7 = vld [vmem:[#allocation2 + $0x3] sm:$0x1f] }
 0x196   :  { %316 = vst.msk [vmem:[#allocation2 + $0xb] sm:$0x1f] %vm314_vm4, %v313_v5  ;;  %v312_v8 = vadd.f32 %v310_v6, %v303_v7 }
 0x198   :  { %315 = vst.msk [vmem:[#allocation2 + $0x3] sm:$0x1f] %vm314_vm4, %v312_v8 }
 0x19d   :  { %v318_v9 = vld [vmem:[#allocation2 + $0x8] sm:$0xff] }
 0x19e   :  { %v320_v10 = vsub.f32 0.0, %v318_v9 }
 0x19f   :  { %v317_v11 = vld [vmem:[#allocation2] sm:$0xff] }
 0x1a0   :  { %v319_v12 = vsub.f32 0.0, %v317_v11  ;;  %v323_v13 = vmul.f32 1.442695, %v320_v10 }
 0x1a2   :  { %v321_v14 = vmul.f32 1.442695, %v319_v12  ;;  %2119 = vpow2.f32 %v323_v13 }
 0x1a4   :  { %2121 = vpow2.f32 %v321_v14 }
 0x1af   :  { %v2120_v15 = vpop.eup %2119 }
 0x1b0   :  { %v326_v16 = vadd.f32 1.0, %v2120_v15 }
 0x1b1   :  { %v2122_v17 = vpop.eup %2121 }
 0x1b2   :  { %v325_v18 = vadd.f32 1.0, %v2122_v17  ;;  %2123 = vrcp.f32 %v326_v16 }
 0x1b4   :  { %2125 = vrcp.f32 %v325_v18 }
 0x1bf   :  { %v2124_v19 = vpop.eup %2123 }
 0x1c0   :  { %v2454_v22 = vmul.f32 %v2124_v19, %v318_v9 }
 0x1c1   :  { %v2126_v20 = vpop.eup %2125 }
 0x1c2   :  { %v2452_v21 = vmul.f32 %v2126_v20, %v317_v11 }
 0x1c4   :  { %2006 = vmatprep.mubr.msk.f32.mxu0 %vm272_vm1, %v2452_v21  ;;  %2025 = vmatprep.mubr.msk.f32.mxu1 %vm272_vm1, %v2452_v21 }
 0x1c5   :  { %2007 = vmatmul.mubr.msk.f32.vlgmr.msra.gmra.mxu0 %vm272_vm1, %v2454_v22  ;;  %2026 = vmatmul.mubr.msk.f32.vlgmr.msra.gmra.mxu1 %vm272_vm1, %v2454_v22 }
 0x1c6   :  { %2029 = vmatpush3.msra.mxu0 %v2432_v43  ;;  %2044 = vmatprep.mubr.msk.f32.mxu0 %vm272_vm1, %v2452_v21  ;;  %v2506_v43 = vsub.s32 4, %v616_v31 }
 0x1c7   :  { %2030 = vmatprep.subr.mxu0 %v511_v23 }
 0x1c8   :  { %2031 = vmatpush3.msra.mxu0 %v511_v23 }
 0x1c9   :  { %2032 = vmatprep.subr.mxu0 %v510_v24 }
 0x1ca   :  { %2033 = vmatpush3.msra.mxu0 %v510_v24 }
 0x1cb   :  { %2034 = vmatprep.subr.mxu0 %v509_v25 }
 0x1cc   :  { %2035 = vmatpush3.msra.mxu0 %v509_v25 }
 0x1cd   :  { %2036 = vmatprep.subr.mxu0 %v508_v26 }
 0x1ce   :  { %2037 = vmatpush3.msra.mxu0 %v508_v26 }
 0x1cf   :  { %2038 = vmatprep.subr.mxu0 %v507_v27 }
 0x1d0   :  { %2039 = vmatpush3.msra.mxu0 %v507_v27 }
 0x1d1   :  { %2040 = vmatprep.subr.mxu0 %v506_v28 }
 0x1d2   :  { %2041 = vmatpush3.msra.mxu0 %v506_v28 }
 0x1d3   :  { %2042 = vmatprep.subr.mxu0 %v505_v29 }
 0x1d4   :  { %2043 = vmatpush3.msra.mxu0 %v505_v29 }
 0x1d5   :  { %2045 = vmatmul.mubr.msk.f32.vlgmr.msra.gmra.mxu0 %vm272_vm1, %v2454_v22 }
 0x285   :  { %v2008_v35 = vpop.f32.mrf.mxu0  ;;  %v2525_v59 = vpop.f32.mrf.mxu1 }
 0x286   :  { %v651_v36 = vrot.slane %v2008_v35, %v2492_v33  ;;  %v760_v39 = vrot.slane %v2008_v35, %v2497_v37  ;;  %v868_v40 = vrot.slane %v2008_v35, %v2499_v38  ;;  %v976_v42 = vrot.slane %v2008_v35, %v2503_v41 }
 0x287   :  { %v1084_v44 = vrot.slane %v2008_v35, %v2506_v43  ;;  %v2511_v46 = vpop.f32.mrf.mxu0  ;;  %v1192_v48 = vrot.slane %v2008_v35, %v2509_v45  ;;  %v1300_v54 = vrot.slane %v2008_v35, %v2514_v49  ;;  %v1408_v58 = vrot.slane %v2008_v35, %v2520_v55 }
 0x288   :  { %657 = vbcast.lane.b32.xlu1 %v651_v36, 264  ;;  %653 = vbcast.lane.b32.xlu0 %v651_v36, 256  ;;  %v693_v62 = vrot.slane %v2525_v59, %v2492_v33  ;;  %v802_v0 = vrot.slane %v2525_v59, %v2497_v37  ;;  %v910_v2 = vrot.slane %v2525_v59, %v2499_v38 }
 0x289   :  { %v1018_v3 = vrot.slane %v2525_v59, %v2503_v41  ;;  %v1126_v5 = vrot.slane %v2525_v59, %v2506_v43  ;;  %v1234_v7 = vrot.slane %v2525_v59, %v2509_v45  ;;  %v1342_v9 = vrot.slane %v2525_v59, %v2514_v49 }
 0x28a   :  { %v857_v11 = vrot.slane %v2511_v46, %v2499_v38  ;;  %v965_v12 = vrot.slane %v2511_v46, %v2503_v41  ;;  %v1073_v14 = vrot.slane %v2511_v46, %v2506_v43  ;;  %v640_v15 = vrot.slane %v2511_v46, %v2492_v33 }
 0x28b   :  { %v1181_v18 = vrot.slane %v2511_v46, %v2509_v45  ;;  %v1289_v23 = vrot.slane %v2511_v46, %v2514_v49  ;;  %v749_v24 = vrot.slane %v2511_v46, %v2497_v37  ;;  %v1397_v29 = vrot.slane %v2511_v46, %v2520_v55  ;;  %v496_v46 = vpop.f32.mrf.mxu1 }
 0x28c   :  { %762 = vbcast.lane.b32.xlu1 %v760_v39, 256  ;;  %874 = vbcast.lane.b32.xlu0 %v868_v40, 264 }
 0x290   :  { %766 = vbcast.lane.b32.xlu1 %v760_v39, 264  ;;  %982 = vbcast.lane.b32.xlu0 %v976_v42, 264 }
 0x294   :  { %870 = vbcast.lane.b32.xlu1 %v868_v40, 256  ;;  %1090 = vbcast.lane.b32.xlu0 %v1084_v44, 264 }
 0x295   :  { %v2046_v47 = vpop.f32.mrf.mxu0 }
 0x296   :  { %v2522_v56 = vadd.f32 %v2046_v47, %v1880_v50 }
 0x297   :  { %v586_v51 = vpop.f32.mrf.mxu0 }
 0x298   :  { %v587_v52 = vadd.f32 %v1880_v50, %v586_v51  ;;  %978 = vbcast.lane.b32.xlu1 %v976_v42, 256  ;;  %1198 = vbcast.lane.b32.xlu0 %v1192_v48, 264  ;;  %v598_v60 = vand.u32 2147483647, %v2522_v56  ;;  %v596_v39 = vmax.f32 %v2522_v56, 0.0 }
 0x29a   :  { %v597_v53 = vand.u32 2147483647, %v587_v52  ;;  %v600_v63 = vsub.f32 0.0, %v598_v60  ;;  %v595_v17 = vmax.f32 %v587_v52, 0.0 }
 0x29c   :  { %v599_v57 = vsub.f32 0.0, %v597_v53  ;;  %1086 = vbcast.lane.b32.xlu1 %v1084_v44, 256  ;;  %1306 = vbcast.lane.b32.xlu0 %v1300_v54, 264  ;;  %v603_v1 = vmul.f32 1.442695, %v600_v63  ;;  %v682_v53 = vrot.slane %v496_v46, %v2492_v33  ;;  %v791_v63 = vrot.slane %v496_v46, %v2497_v37 }
 0x29e   :  { %v601_v61 = vmul.f32 1.442695, %v599_v57 }
 0x2a0   :  { %1194 = vbcast.lane.b32.xlu1 %v1192_v48, 256  ;;  %1414 = vbcast.lane.b32.xlu0 %v1408_v58, 264  ;;  %2127 = vpow2.f32 %v601_v61 }
 0x2a1   :  { %2129 = vpow2.f32 %v603_v1 }
 0x2a4   :  { %1302 = vbcast.lane.b32.xlu1 %v1300_v54, 256  ;;  %699 = vbcast.lane.b32.xlu0 %v693_v62, 264  ;;  %v2604_v54 = vld [vmem:[%s3095_s10] sm:$0xff] }
 0x2a8   :  { %1410 = vbcast.lane.b32.xlu1 %v1408_v58, 256  ;;  %808 = vbcast.lane.b32.xlu0 %v802_v0, 264 }
 0x2ac   :  { %695 = vbcast.lane.b32.xlu1 %v693_v62, 256  ;;  %916 = vbcast.lane.b32.xlu0 %v910_v2, 264 }
 0x2ad   :  { %v2128_v4 = vpop.eup %2127 }
 0x2ae   :  { %v605_v6 = vadd.f32 1.0, %v2128_v4  ;;  %v2130_v8 = vpop.eup %2129 }
 0x2af   :  { %v606_v10 = vadd.f32 1.0, %v2130_v8 }
 0x2b0   :  { %804 = vbcast.lane.b32.xlu1 %v802_v0, 256  ;;  %1024 = vbcast.lane.b32.xlu0 %v1018_v3, 264  ;;  %2131 = vlog2.f32 %v605_v6  ;;  %v899_v6 = vrot.slane %v496_v46, %v2499_v38 }
 0x2b1   :  { %2133 = vlog2.f32 %v606_v10  ;;  %v1007_v10 = vrot.slane %v496_v46, %v2503_v41 }
 0x2b4   :  { %912 = vbcast.lane.b32.xlu1 %v910_v2, 256  ;;  %1132 = vbcast.lane.b32.xlu0 %v1126_v5, 264 }
 0x2b8   :  { %1020 = vbcast.lane.b32.xlu1 %v1018_v3, 256  ;;  %1240 = vbcast.lane.b32.xlu0 %v1234_v7, 264 }
 0x2bc   :  { %1128 = vbcast.lane.b32.xlu1 %v1126_v5, 256  ;;  %1348 = vbcast.lane.b32.xlu0 %v1342_v9, 264 }
 0x2bd   :  { %v2132_v13 = vpop.eup %2131 }
 0x2be   :  { %v608_v16 = vmul.f32 0.6931472, %v2132_v13  ;;  %v2134_v20 = vpop.eup %2133 }
 0x2bf   :  { %v610_v25 = vmul.f32 0.6931472, %v2134_v20  ;;  %v2661_v20 = vrot.slane %v496_v46, %v2509_v45 }
 0x2c0   :  { %1236 = vbcast.lane.b32.xlu1 %v1234_v7, 256  ;;  %863 = vbcast.lane.b32.xlu0 %v857_v11, 264  ;;  %v2552_v19 = vadd.f32 %v608_v16, %v595_v17 }
 0x2c1   :  { %v2596_v51 = vadd.f32 %v610_v25, %v596_v39 }
 0x2c2   :  { %v618_v26 = vrot.slane %v2552_v19, %v2492_v33  ;;  %v729_v27 = vrot.slane %v2552_v19, %v2497_v37  ;;  %v837_v28 = vrot.slane %v2552_v19, %v2499_v38  ;;  %v945_v31 = vrot.slane %v2552_v19, %v2503_v41 }
 0x2c3   :  { %v1053_v35 = vrot.slane %v2552_v19, %v2506_v43  ;;  %v1161_v36 = vrot.slane %v2552_v19, %v2509_v45  ;;  %v1269_v52 = vrot.slane %v2552_v19, %v2514_v49  ;;  %v1377_v58 = vrot.slane %v2552_v19, %v2520_v55 }
 0x2c4   :  { %1344 = vbcast.lane.b32.xlu1 %v1342_v9, 256  ;;  %971 = vbcast.lane.b32.xlu0 %v965_v12, 264  ;;  %v2579_v40 = vmul.f32 %v618_v26, %v2569_v30  ;;  %v2582_v42 = vmul.f32 %v729_v27, %v2569_v30  ;;  %v2585_v44 = vmul.f32 %v837_v28, %v2569_v30 }
 0x2c5   :  { %v2588_v47 = vmul.f32 %v945_v31, %v2569_v30  ;;  %v2591_v48 = vmul.f32 %v1053_v35, %v2569_v30  ;;  %v2594_v50 = vmul.f32 %v1161_v36, %v2569_v30  ;;  %v2607_v56 = vmul.f32 %v1269_v52, %v2569_v30 }
 0x2c6   :  { %v2610_v57 = vmul.f32 %v618_v26, %v2604_v54  ;;  %v2615_v60 = vmul.f32 %v729_v27, %v2604_v54  ;;  %v1381_v61 = vrot.slane %v2596_v51, %v2520_v55  ;;  %v2620_v62 = vmul.f32 %v1377_v58, %v2569_v30 }
 0x2c7   :  { %v2627_v1 = vmul.f32 %v837_v28, %v2604_v54  ;;  %v2630_v2 = vmul.f32 %v945_v31, %v2604_v54  ;;  %v2633_v3 = vmul.f32 %v1053_v35, %v2604_v54  ;;  %v2636_v4 = vmul.f32 %v1161_v36, %v2604_v54 }
 0x2c8   :  { %1079 = vbcast.lane.b32.xlu0 %v1073_v14, 264  ;;  %642 = vbcast.lane.b32.xlu1 %v640_v15, 256  ;;  %v2624_v0 = vmul.f32 %v1381_v61, %v2569_v30  ;;  %v2639_v5 = vmul.f32 %v1269_v52, %v2604_v54  ;;  %v2643_v7 = vmul.f32 %v1377_v58, %v2604_v54 }
 0x2c9   :  { %v2646_v8 = vmul.f32 %v1381_v61, %v2604_v54  ;;  %v622_v9 = vrot.slane %v2596_v51, %v2492_v33  ;;  %v733_v13 = vrot.slane %v2596_v51, %v2497_v37  ;;  %v2668_v26 = vrot.slane %v496_v46, %v2514_v49 }
 0x2ca   :  { %v949_v27 = vrot.slane %v2596_v51, %v2503_v41  ;;  %v2676_v31 = vrot.slane %v496_v46, %v2520_v55  ;;  %v1057_v35 = vrot.slane %v2596_v51, %v2506_v43  ;;  %v2684_v52 = vmul.f32 %v2596_v51, %v2454_v22 }
 0x2cc   :  { %1187 = vbcast.lane.b32.xlu0 %v1181_v18, 264  ;;  %646 = vbcast.lane.b32.xlu1 %v640_v15, 264  ;;  %v2656_v15 = vrot.slane %v496_v46, %v2506_v43  ;;  %v953_v39 = vmul.f32 %v949_v27, %v2569_v30  ;;  %v952_v58 = vmul.f32 %v949_v27, %v2604_v54 }
 0x2cd   :  { %v2689_v46 = vrot.slane %v2525_v59, %v2520_v55  ;;  %v1061_v61 = vmul.f32 %v1057_v35, %v2569_v30 }
 0x2d0   :  { %1295 = vbcast.lane.b32.xlu0 %v1289_v23, 264  ;;  %751 = vbcast.lane.b32.xlu1 %v749_v24, 256 }
 0x2d4   :  { %1403 = vbcast.lane.b32.xlu0 %v1397_v29, 264  ;;  %755 = vbcast.lane.b32.xlu1 %v749_v24, 264  ;;  %v737_v24 = vmul.f32 %v733_v13, %v2569_v30 }
 0x2d6   :  { %v744_v28 = vmul.f32 1.442695, %v737_v24 }
 0x2d8   :  { %688 = vbcast.lane.b32.xlu0 %v682_v53, 264  ;;  %859 = vbcast.lane.b32.xlu1 %v857_v11, 256  ;;  %v625_v11 = vmul.f32 %v622_v9, %v2604_v54 }
 0x2da   :  { %v631_v16 = vmul.f32 1.442695, %v625_v11  ;;  %v1165_v11 = vrot.slane %v2596_v51, %v2509_v45 }
 0x2dc   :  { %797 = vbcast.lane.b32.xlu0 %v791_v63, 264  ;;  %967 = vbcast.lane.b32.xlu1 %v965_v12, 256  ;;  %v626_v12 = vmul.f32 %v622_v9, %v2569_v30  ;;  %2135 = vpow2.f32 %v631_v16  ;;  %v1060_v16 = vmul.f32 %v1057_v35, %v2604_v54  ;;  %v1169_v27 = vmul.f32 %v1165_v11, %v2569_v30 }
 0x2de   :  { %v633_v17 = vmul.f32 1.442695, %v626_v12  ;;  %v666_v12 = vrot.slane %v2684_v52, %v2492_v33 }
 0x2e0   :  { %905 = vbcast.lane.b32.xlu0 %v899_v6, 264  ;;  %1075 = vbcast.lane.b32.xlu1 %v1073_v14, 256  ;;  %v736_v14 = vmul.f32 %v733_v13, %v2604_v54  ;;  %2137 = vpow2.f32 %v633_v17  ;;  %v958_v13 = vmul.f32 1.442695, %v952_v58 }
 0x2e2   :  { %v742_v25 = vmul.f32 1.442695, %v736_v14 }
 0x2e4   :  { %1013 = vbcast.lane.b32.xlu0 %v1007_v10, 264  ;;  %1183 = vbcast.lane.b32.xlu1 %v1181_v18, 256  ;;  %v841_v18 = vrot.slane %v2596_v51, %v2499_v38  ;;  %2139 = vpow2.f32 %v742_v25 }
 0x2e5   :  { %2141 = vpow2.f32 %v744_v28  ;;  %v1273_v28 = vrot.slane %v2596_v51, %v2514_v49 }
 0x2e7   :  { %v1277_v51 = vmul.f32 %v1273_v28, %v2569_v30 }
 0x2e8   :  { %1121 = vbcast.lane.b32.xlu0 %v2656_v15, 264  ;;  %1291 = vbcast.lane.b32.xlu1 %v1289_v23, 256  ;;  %v845_v23 = vmul.f32 %v841_v18, %v2569_v30  ;;  %v883_v30 = vrot.slane %v2684_v52, %v2499_v38 }
 0x2e9   :  { %v2136_v9 = vpop.eup %2135 }
 0x2ea   :  { %v852_v36 = vmul.f32 1.442695, %v845_v23  ;;  %v673_v25 = vmul.f32 0.0, %v2136_v9  ;;  %v1068_v23 = vmul.f32 1.442695, %v1061_v61 }
 0x2eb   :  { %v1176_v61 = vmul.f32 1.442695, %v1169_v27 }
 0x2ec   :  { %1229 = vbcast.lane.b32.xlu0 %v2661_v20, 264  ;;  %1399 = vbcast.lane.b32.xlu1 %v1397_v29, 256  ;;  %v844_v29 = vmul.f32 %v841_v18, %v2604_v54  ;;  %2143 = vpow2.f32 %v852_v36  ;;  %v775_v18 = vrot.slane %v2684_v52, %v2497_v37 }
 0x2ed   :  { %v2138_v59 = vpop.eup %2137 }
 0x2ee   :  { %v674_v35 = vmul.f32 0.0, %v2138_v59 }
 0x2f0   :  { %1337 = vbcast.lane.b32.xlu0 %v2668_v26, 264  ;;  %684 = vbcast.lane.b32.xlu1 %v682_v53, 256  ;;  %v850_v53 = vmul.f32 1.442695, %v844_v29  ;;  %v1168_v29 = vmul.f32 %v1165_v11, %v2604_v54  ;;  %v1276_v11 = vmul.f32 %v1273_v28, %v2604_v54 }
 0x2f2   :  { %2145 = vpow2.f32 %v850_v53  ;;  %v2140_v53 = vpop.eup %2139  ;;  %v1282_v54 = vmul.f32 1.442695, %v1276_v11 }
 0x2f4   :  { %1445 = vbcast.lane.b32.xlu0 %v2676_v31, 264  ;;  %793 = vbcast.lane.b32.xlu1 %v791_v63, 256  ;;  %v960_v63 = vmul.f32 1.442695, %v953_v39  ;;  %v1066_v39 = vmul.f32 1.442695, %v1060_v16 }
 0x2f6   :  { %2147 = vpow2.f32 %v960_v63  ;;  %v1174_v63 = vmul.f32 1.442695, %v1168_v29 }
 0x2f7   :  { %2149 = vpow2.f32 %v958_v13  ;;  %v2142_v13 = vpop.eup %2141 }
 0x2f8   :  { %1456 = vbcast.lane.b32.xlu0 %v2689_v46, 264  ;;  %901 = vbcast.lane.b32.xlu1 %v899_v6, 256  ;;  %2151 = vpow2.f32 %v1068_v23 }
 0x2f9   :  { %2153 = vpow2.f32 %v1066_v39 }
 0x2fa   :  { %v658_v17 = vpop.permute.xlu1 %657  ;;  %v654_v14 = vpop.permute.xlu0 %653  ;;  %2155 = vpow2.f32 %v1176_v61 }
 0x2fb   :  { %v670_v24 = vmul.f32 %v666_v12, %v658_v17  ;;  %v669_v6 = vmul.f32 %v666_v12, %v654_v14  ;;  %2157 = vpow2.f32 %v1174_v63 }
 0x2fc   :  { %1009 = vbcast.lane.b32.xlu1 %v1007_v10, 256 }
 0x2fd   :  { %v2704_v36 = vadd.f32 %v673_v25, %v669_v6  ;;  %v2706_v9 = vadd.f32 %v674_v35, %v670_v24  ;;  %v2144_v25 = vpop.eup %2143 }
 0x2fe   :  { %v763_v58 = vpop.permute.xlu1 %762  ;;  %v875_v17 = vpop.permute.xlu0 %874 }
 0x2ff   :  { %v778_v12 = vmul.f32 %v775_v18, %v763_v58  ;;  %v782_v10 = vmul.f32 %v2140_v53, %v2704_v36  ;;  %v783_v6 = vmul.f32 %v2142_v13, %v2706_v9  ;;  %v2146_v27 = vpop.eup %2145  ;;  %v1392_v58 = vmul.f32 1.442695, %v2624_v0 }
 0x300   :  { %1117 = vbcast.lane.b32.xlu1 %v2656_v15, 256  ;;  %v1284_v15 = vmul.f32 1.442695, %v1277_v51 }
 0x301   :  { %v2713_v24 = vadd.f32 %v782_v10, %v778_v12 }
 0x302   :  { %v767_v16 = vpop.permute.xlu1 %766  ;;  %v983_v59 = vpop.permute.xlu0 %982  ;;  %2159 = vpow2.f32 %v1284_v15 }
 0x303   :  { %v779_v14 = vmul.f32 %v775_v18, %v767_v16  ;;  %v887_v18 = vmul.f32 %v883_v30, %v875_v17  ;;  %v890_v53 = vmul.f32 %v2146_v27, %v2713_v24  ;;  %v2148_v12 = vpop.eup %2147  ;;  %2161 = vpow2.f32 %v1282_v54 }
 0x304   :  { %1225 = vbcast.lane.b32.xlu1 %v2661_v20, 256  ;;  %v991_v20 = vrot.slane %v2684_v52, %v2503_v41  ;;  %v1390_v17 = vmul.f32 1.442695, %v2646_v8  ;;  %v2150_v51 = vpop.eup %2149  ;;  %2163 = vpow2.f32 %v1392_v58 }
 0x305   :  { %v2718_v23 = vadd.f32 %v783_v6, %v779_v14  ;;  %v2152_v0 = vpop.eup %2151  ;;  %v1099_v6 = vrot.slane %v2684_v52, %v2506_v43 }
 0x306   :  { %v871_v28 = vpop.permute.xlu1 %870  ;;  %v1091_v29 = vpop.permute.xlu0 %1090  ;;  %v995_v13 = vmul.f32 %v991_v20, %v983_v59  ;;  %2165 = vpow2.f32 %v1390_v17 }
 0x307   :  { %v886_v35 = vmul.f32 %v883_v30, %v871_v28  ;;  %v891_v39 = vmul.f32 %v2144_v25, %v2718_v23  ;;  %v2154_v8 = vpop.eup %2153  ;;  %v1103_v54 = vmul.f32 %v1099_v6, %v1091_v29 }
 0x308   :  { %1333 = vbcast.lane.b32.xlu1 %v2668_v26, 256 }
 0x309   :  { %v2726_v10 = vadd.f32 %v891_v39, %v887_v18  ;;  %v2728_v61 = vadd.f32 %v890_v53, %v886_v35  ;;  %v2156_v35 = vpop.eup %2155  ;;  %v1423_v39 = vrot.slane %v2684_v52, %v2520_v55 }
 0x30a   :  { %v979_v63 = vpop.permute.xlu1 %978  ;;  %v1199_v11 = vpop.permute.xlu0 %1198 }
 0x30b   :  { %v994_v16 = vmul.f32 %v991_v20, %v979_v63  ;;  %v999_v14 = vmul.f32 %v2148_v12, %v2726_v10  ;;  %v998_v26 = vmul.f32 %v2150_v51, %v2728_v61  ;;  %v2158_v58 = vpop.eup %2157 }
 0x30c   :  { %1441 = vbcast.lane.b32.xlu1 %v2676_v31, 256  ;;  %v1207_v31 = vrot.slane %v2684_v52, %v2509_v45 }
 0x30d   :  { %v2736_v15 = vadd.f32 %v999_v14, %v995_v13  ;;  %v2738_v25 = vadd.f32 %v998_v26, %v994_v16  ;;  %v1517_v14 = vld [vmem:[%s3097_s12 + $0x30] sm:$0xff] }
 0x30e   :  { %v1087_v30 = vpop.permute.xlu1 %1086  ;;  %v1307_v59 = vpop.permute.xlu0 %1306  ;;  %v1211_v29 = vmul.f32 %v1207_v31, %v1199_v11  ;;  %v1315_v11 = vrot.slane %v2684_v52, %v2514_v49  ;;  %v1515_v52 = vld [vmem:[%s3097_s12 + $0x20] sm:$0xff] }
 0x30f   :  { %v1102_v27 = vmul.f32 %v1099_v6, %v1087_v30  ;;  %v1107_v28 = vmul.f32 %v2152_v0, %v2736_v15  ;;  %v1106_v18 = vmul.f32 %v2154_v8, %v2738_v25  ;;  %v2160_v26 = vpop.eup %2159 }
 0x310   :  { %1452 = vbcast.lane.b32.xlu1 %v2689_v46, 256  ;;  %v1518_v46 = vld [vmem:[%s3097_s12 + $0x38] sm:$0xff]  ;;  %v2162_v8 = vpop.eup %2161 }
 0x311   :  { %v2747_v53 = vadd.f32 %v1107_v28, %v1103_v54  ;;  %v2749_v20 = vadd.f32 %v1106_v18, %v1102_v27  ;;  %2047 = vmatprep.subr.mxu1 %v1518_v46  ;;  %v1516_v27 = vld [vmem:[%s3097_s12 + $0x28] sm:$0xff]  ;;  %v1319_v28 = vmul.f32 %v1315_v11, %v1307_v59 }
 0x312   :  { %v1195_v12 = vpop.permute.xlu1 %1194  ;;  %v1415_v17 = vpop.permute.xlu0 %1414  ;;  %2048 = vmatpush3.msra.mxu1 %v1518_v46 }
 0x313   :  { %v1210_v51 = vmul.f32 %v1207_v31, %v1195_v12  ;;  %v1427_v63 = vmul.f32 %v1423_v39, %v1415_v17  ;;  %v1215_v13 = vmul.f32 %v2156_v35, %v2747_v53  ;;  %v1214_v16 = vmul.f32 %v2158_v58, %v2749_v20  ;;  %2049 = vmatprep.subr.mxu1 %v1517_v14  ;;  %v2164_v58 = vpop.eup %2163 }
 0x314   :  { %2050 = vmatpush3.msra.mxu1 %v1517_v14  ;;  %v2166_v17 = vpop.eup %2165 }
 0x315   :  { %v2761_v0 = vadd.f32 %v1215_v13, %v1211_v29  ;;  %v2763_v6 = vadd.f32 %v1214_v16, %v1210_v51  ;;  %2051 = vmatprep.subr.mxu1 %v1516_v27  ;;  %v1514_v13 = vld [vmem:[%s3097_s12 + $0x18] sm:$0xff] }
 0x316   :  { %v1303_v30 = vpop.permute.xlu1 %1302  ;;  %v700_v54 = vpop.permute.xlu0 %699  ;;  %2052 = vmatpush3.msra.mxu1 %v1516_v27 }
 0x317   :  { %v1318_v18 = vmul.f32 %v1315_v11, %v1303_v30  ;;  %v1323_v31 = vmul.f32 %v2160_v26, %v2761_v0  ;;  %v1322_v35 = vmul.f32 %v2162_v8, %v2763_v6  ;;  %2053 = vmatprep.subr.mxu1 %v1515_v52  ;;  %v1513_v26 = vld [vmem:[%s3097_s12 + $0x10] sm:$0xff]  ;;  %v704_v11 = vmul.f32 %v700_v54, %v2706_v9  ;;  %v1511_v9 = vld [vmem:[%s3097_s12] sm:$0xff] }
 0x318   :  { %2054 = vmatpush3.msra.mxu1 %v1515_v52 }
 0x319   :  { %v2773_v29 = vadd.f32 %v1323_v31, %v1319_v28  ;;  %v2775_v12 = vadd.f32 %v1322_v35, %v1318_v18  ;;  %2055 = vmatprep.subr.mxu1 %v1514_v13 }
 0x31a   :  { %v1411_v51 = vpop.permute.xlu1 %1410  ;;  %v809_v59 = vpop.permute.xlu0 %808  ;;  %2056 = vmatpush3.msra.mxu1 %v1514_v13 }
 0x31b   :  { %v1426_v16 = vmul.f32 %v1423_v39, %v1411_v51  ;;  %v1431_v46 = vmul.f32 %v2164_v58, %v2773_v29  ;;  %v1430_v14 = vmul.f32 %v2166_v17, %v2775_v12  ;;  %v1512_v39 = vld [vmem:[%s3097_s12 + $0x8] sm:$0xff]  ;;  %2057 = vmatprep.subr.mxu1 %v1513_v26  ;;  %v813_v54 = vmul.f32 %v809_v59, %v2718_v23  ;;  %s2239_s12 = smov [#allocation4]  }
 0x31c   :  { %2058 = vmatpush3.msra.mxu1 %v1513_v26  ;;  %s1855_s5 = sshll.u32 %s2239_s12, 4  ;;  %s1856_s5 = int_to_ptr.vmem [resolvable:$true] %s1855_s5 }
 0x31d   :  { %v2786_v8 = vadd.f32 %v1431_v46, %v1427_v63  ;;  %v2788_v30 = vadd.f32 %v1430_v14, %v1426_v16  ;;  %v715_v63 = vsel %vm272_vm1, %v704_v11, 0.0  ;;  %2059 = vmatprep.subr.mxu1 %v1512_v39  ;;  %v824_v51 = vsel %vm272_vm1, %v813_v54, 0.0  ;;  %p2222_p1 = scmp.lt.s32.totalorder %s1856_s5, %s1856_s5 }
 0x31e   :  { %v696_v27 = vpop.permute.xlu1 %695  ;;  %v917_v28 = vpop.permute.xlu0 %916  ;;  %2060 = vmatpush3.msra.mxu1 %v1512_v39  ;;  %v627_v11 = vmul.f32 1.442695, %v2610_v57 }
 0x31f   :  { %v703_v18 = vmul.f32 %v696_v27, %v2704_v36  ;;  %2061 = vmatprep.subr.mxu1 %v1511_v9  ;;  %v921_v13 = vmul.f32 %v917_v28, %v2726_v10 }
 0x320   :  { %2062 = vmatpush3.msra.mxu1 %v1511_v9  ;;  %2167 = vpow2.f32 %v627_v11 }
 0x321   :  { %v714_v31 = vsel %vm272_vm1, %v703_v18, 0.0 }
 0x322   :  { %v716_v35 = vadd.f32 %v715_v63, %v714_v31  ;;  %v805_v52 = vpop.permute.xlu1 %804  ;;  %v1025_v58 = vpop.permute.xlu0 %1024 }
 0x323   :  { %v812_v17 = vmul.f32 %v805_v52, %v2713_v24  ;;  %v932_v24 = vsel %vm272_vm1, %v921_v13, 0.0  ;;  %v1029_v18 = vmul.f32 %v1025_v58, %v2736_v15  ;;  %v629_v52 = vmul.f32 1.442695, %v2579_v40 }
 0x324   :  { %v717_v36 = vrot.slane %v716_v35, 4 }
 0x325   :  { %v823_v16 = vsel %vm272_vm1, %v812_v17, 0.0  ;;  %2169 = vpow2.f32 %v629_v52 }
 0x326   :  { %v718_v46 = vadd.f32 %v717_v36, %v716_v35  ;;  %v825_v23 = vadd.f32 %v824_v51, %v823_v16  ;;  %v913_v59 = vpop.permute.xlu1 %912  ;;  %v1133_v14 = vpop.permute.xlu0 %1132  ;;  %v1040_v36 = vsel %vm272_vm1, %v1029_v18, 0.0  ;;  %v738_v51 = vmul.f32 1.442695, %v2615_v60 }
 0x327   :  { %v920_v26 = vmul.f32 %v913_v59, %v2728_v61  ;;  %v1137_v15 = vmul.f32 %v1133_v14, %v2747_v53  ;;  %v740_v53 = vmul.f32 1.442695, %v2582_v42 }
 0x328   :  { %v719_v27 = vrot.slane %v718_v46, 2  ;;  %v826_v39 = vrot.slane %v825_v23, 4  ;;  %2171 = vpow2.f32 %v738_v51 }
 0x329   :  { %v931_v9 = vsel %vm272_vm1, %v920_v26, 0.0  ;;  %v1148_v14 = vsel %vm272_vm1, %v1137_v15, 0.0  ;;  %2173 = vpow2.f32 %v740_v53 }
 0x32a   :  { %v720_v63 = vadd.f32 %v719_v27, %v718_v46  ;;  %v827_v10 = vadd.f32 %v826_v39, %v825_v23  ;;  %v933_v28 = vadd.f32 %v932_v24, %v931_v9  ;;  %v1021_v54 = vpop.permute.xlu1 %1020  ;;  %v1241_v31 = vpop.permute.xlu0 %1240 }
 0x32b   :  { %v1028_v35 = vmul.f32 %v1021_v54, %v2738_v25  ;;  %v1245_v60 = vmul.f32 %v1241_v31, %v2761_v0  ;;  %v2826_v54 = vmul.f32 %v2552_v19, %v2452_v21 }
 0x32c   :  { %v721_v57 = vrot.slane %v720_v63, 1  ;;  %v828_v61 = vrot.slane %v827_v10, 2  ;;  %v934_v17 = vrot.slane %v933_v28, 4 }
 0x32d   :  { %v1039_v58 = vsel %vm272_vm1, %v1028_v35, 0.0  ;;  %v1256_v35 = vsel %vm272_vm1, %v1245_v60, 0.0 }
 0x32e   :  { %v722_v13 = vadd.f32 %v721_v57, %v720_v63  ;;  %v829_v16 = vadd.f32 %v828_v61, %v827_v10  ;;  %v935_v46 = vadd.f32 %v934_v17, %v933_v28  ;;  %v1041_v23 = vadd.f32 %v1040_v36, %v1039_v58  ;;  %v1129_v25 = vpop.permute.xlu1 %1128  ;;  %v1349_v59 = vpop.permute.xlu0 %1348 }
 0x32f   :  { %v1136_v40 = vmul.f32 %v1129_v25, %v2749_v20  ;;  %v1353_v52 = vmul.f32 %v1349_v59, %v2773_v29  ;;  %v846_v61 = vmul.f32 1.442695, %v2627_v1  ;;  %v662_v29 = vrot.slane %v2826_v54, %v2492_v33 }
 0x330   :  { %725 = vst.msk [vmem:[#allocation3 + $0x8] sm:$0x1] %vm723_vm5, %v722_v13  ;;  %v830_v26 = vrot.slane %v829_v16, 1  ;;  %v936_v11 = vrot.slane %v935_v46, 2  ;;  %v1042_v27 = vrot.slane %v1041_v23, 4  ;;  %v2168_v13 = vpop.eup %2167 }
 0x331   :  { %v1147_v39 = vsel %vm272_vm1, %v1136_v40, 0.0  ;;  %v1364_v1 = vsel %vm272_vm1, %v1353_v52, 0.0  ;;  %v848_v59 = vmul.f32 1.442695, %v2585_v44  ;;  %2175 = vpow2.f32 %v846_v61 }
 0x332   :  { %v831_v24 = vadd.f32 %v830_v26, %v829_v16  ;;  %v937_v18 = vadd.f32 %v936_v11, %v935_v46  ;;  %v1043_v9 = vadd.f32 %v1042_v27, %v1041_v23  ;;  %v1149_v63 = vadd.f32 %v1148_v14, %v1147_v39  ;;  %v1237_v20 = vpop.permute.xlu1 %1236  ;;  %v2821_v10 = vpop.permute.xlu0 %863 }
 0x333   :  { %v1244_v28 = vmul.f32 %v1237_v20, %v2763_v6  ;;  %v671_v60 = vmul.f32 0.0, %v2168_v13  ;;  %v2170_v39 = vpop.eup %2169  ;;  %2177 = vpow2.f32 %v848_v59 }
 0x334   :  { %833 = vst.msk [vmem:[#allocation3 + $0x9] sm:$0x1] %vm723_vm5, %v831_v24  ;;  %v938_v42 = vrot.slane %v937_v18, 1  ;;  %v1044_v0 = vrot.slane %v1043_v9, 2  ;;  %v1150_v31 = vrot.slane %v1149_v63, 4 }
 0x335   :  { %v1255_v57 = vsel %vm272_vm1, %v1244_v28, 0.0  ;;  %v2172_v20 = vpop.eup %2171 }
 0x336   :  { %v939_v17 = vadd.f32 %v938_v42, %v937_v18  ;;  %v1045_v6 = vadd.f32 %v1044_v0, %v1043_v9  ;;  %v1151_v36 = vadd.f32 %v1150_v31, %v1149_v63  ;;  %v1257_v15 = vadd.f32 %v1256_v35, %v1255_v57  ;;  %v1345_v19 = vpop.permute.xlu1 %1344  ;;  %v2833_v58 = vpop.permute.xlu0 %971 }
 0x337   :  { %v1352_v51 = vmul.f32 %v1345_v19, %v2775_v12  ;;  %v956_v9 = vmul.f32 1.442695, %v2588_v47  ;;  %v954_v63 = vmul.f32 1.442695, %v2630_v2  ;;  %v672_v57 = vmul.f32 0.0, %v2170_v39 }
 0x338   :  { %941 = vst.msk [vmem:[#allocation3 + $0xa] sm:$0x1] %vm723_vm5, %v939_v17  ;;  %v1046_v16 = vrot.slane %v1045_v6, 1  ;;  %v1152_v46 = vrot.slane %v1151_v36, 2  ;;  %v1258_v23 = vrot.slane %v1257_v15, 4  ;;  %v771_v2 = vrot.slane %v2826_v54, %v2497_v37 }
 0x339   :  { %v1363_v25 = vsel %vm272_vm1, %v1352_v51, 0.0  ;;  %2179 = vpow2.f32 %v956_v9  ;;  %v1062_v19 = vmul.f32 1.442695, %v2633_v3  ;;  %v987_v9 = vrot.slane %v2826_v54, %v2503_v41 }
 0x33a   :  { %v1047_v40 = vadd.f32 %v1046_v16, %v1045_v6  ;;  %v1153_v26 = vadd.f32 %v1152_v46, %v1151_v36  ;;  %v1259_v11 = vadd.f32 %v1258_v23, %v1257_v15  ;;  %v1365_v12 = vadd.f32 %v1364_v1, %v1363_v25  ;;  %v2842_v27 = vpop.permute.xlu0 %1079  ;;  %v643_v53 = vpop.permute.xlu1 %642 }
 0x33b   :  { %v667_v14 = vmul.f32 %v662_v29, %v643_v53  ;;  %v1064_v6 = vmul.f32 1.442695, %v2591_v48  ;;  %v2174_v36 = vpop.eup %2173  ;;  %2181 = vpow2.f32 %v954_v63  ;;  %v1172_v1 = vmul.f32 1.442695, %v2594_v50 }
 0x33c   :  { %1049 = vst.msk [vmem:[#allocation3 + $0xb] sm:$0x1] %vm723_vm5, %v1047_v40  ;;  %v1154_v33 = vrot.slane %v1153_v26, 1  ;;  %v1260_v24 = vrot.slane %v1259_v11, 2  ;;  %v1366_v18 = vrot.slane %v1365_v12, 4  ;;  %v879_v50 = vrot.slane %v2826_v54, %v2499_v38 }
 0x33d   :  { %v2846_v44 = vadd.f32 %v671_v60, %v667_v14  ;;  %2183 = vpow2.f32 %v1064_v6  ;;  %v1170_v25 = vmul.f32 1.442695, %v2636_v4  ;;  %v1280_v53 = vmul.f32 1.442695, %v2607_v56 }
 0x33e   :  { %v1155_v28 = vadd.f32 %v1154_v33, %v1153_v26  ;;  %v1261_v42 = vadd.f32 %v1260_v24, %v1259_v11  ;;  %v1367_v0 = vadd.f32 %v1366_v18, %v1365_v12  ;;  %v2849_v31 = vpop.permute.xlu0 %1187  ;;  %v647_v35 = vpop.permute.xlu1 %646  ;;  %2185 = vpow2.f32 %v1062_v19 }
 0x33f   :  { %v668_v52 = vmul.f32 %v662_v29, %v647_v35  ;;  %v780_v61 = vmul.f32 %v2172_v20, %v2846_v44  ;;  %v2176_v3 = vpop.eup %2175  ;;  %2187 = vpow2.f32 %v1172_v1  ;;  %v1278_v4 = vmul.f32 1.442695, %v2639_v5 }
 0x340   :  { %1157 = vst.msk [vmem:[#allocation3 + $0xc] sm:$0x1] %vm723_vm5, %v1155_v28  ;;  %v1262_v17 = vrot.slane %v1261_v42, 1  ;;  %v1368_v47 = vrot.slane %v1367_v0, 2  ;;  %2189 = vpow2.f32 %v1170_v25  ;;  %v2178_v60 = vpop.eup %2177  ;;  %v885_v33 = vmul.f32 %v879_v50, %v2821_v10 }
 0x341   :  { %v2856_v15 = vadd.f32 %v672_v57, %v668_v52  ;;  %2191 = vpow2.f32 %v1280_v53  ;;  %v1388_v56 = vmul.f32 1.442695, %v2620_v62  ;;  %v1386_v5 = vmul.f32 1.442695, %v2643_v7 }
 0x342   :  { %v1263_v51 = vadd.f32 %v1262_v17, %v1261_v42  ;;  %v1369_v13 = vadd.f32 %v1368_v47, %v1367_v0  ;;  %v2859_v16 = vpop.permute.xlu0 %1295  ;;  %v752_v46 = vpop.permute.xlu1 %751  ;;  %2193 = vpow2.f32 %v1278_v4  ;;  %v993_v0 = vmul.f32 %v987_v9, %v2833_v58 }
 0x343   :  { %v776_v23 = vmul.f32 %v771_v2, %v752_v46  ;;  %v781_v29 = vmul.f32 %v2174_v36, %v2856_v15  ;;  %2195 = vpow2.f32 %v1388_v56  ;;  %v1095_v57 = vrot.slane %v2826_v54, %v2506_v43 }
 0x344   :  { %1265 = vst.msk [vmem:[#allocation3 + $0xd] sm:$0x1] %vm723_vm5, %v1263_v51  ;;  %v1370_v48 = vrot.slane %v1369_v13, 1  ;;  %2197 = vpow2.f32 %v1386_v5 }
 0x345   :  { %v2864_v37 = vadd.f32 %v780_v61, %v776_v23  ;;  %v1101_v6 = vmul.f32 %v1095_v57, %v2842_v27 }
 0x346   :  { %v1371_v59 = vadd.f32 %v1370_v48, %v1369_v13  ;;  %v756_v40 = vpop.permute.xlu1 %755  ;;  %v2869_v12 = vpop.permute.xlu0 %1403  ;;  %v1203_v13 = vrot.slane %v2826_v54, %v2509_v45 }
 0x347   :  { %v777_v26 = vmul.f32 %v771_v2, %v756_v40  ;;  %v888_v11 = vmul.f32 %v2176_v3, %v2864_v37  ;;  %v2180_v63 = vpop.eup %2179 }
 0x348   :  { %1373 = vst.msk [vmem:[#allocation3 + $0xe] sm:$0x1] %vm723_vm5, %v1371_v59  ;;  %v2182_v28 = vpop.eup %2181  ;;  %v1209_v48 = vmul.f32 %v1203_v13, %v2849_v31  ;;  %v1311_v59 = vrot.slane %v2826_v54, %v2514_v49 }
 0x349   :  { %v2874_v14 = vadd.f32 %v781_v29, %v777_v26 }
 0x34a   :  { %v860_v39 = vpop.permute.xlu1 %859  ;;  %v689_v42 = vpop.permute.xlu0 %688 }
 0x34b   :  { %v884_v24 = vmul.f32 %v879_v50, %v860_v39  ;;  %v889_v18 = vmul.f32 %v2178_v60, %v2874_v14  ;;  %v2184_v62 = vpop.eup %2183  ;;  %v1317_v50 = vmul.f32 %v1311_v59, %v2859_v16 }
 0x34c   :  { %v2186_v7 = vpop.eup %2185 }
 0x34d   :  { %v2882_v38 = vadd.f32 %v889_v18, %v885_v33  ;;  %v2884_v20 = vadd.f32 %v888_v11, %v884_v24  ;;  %v2188_v51 = vpop.eup %2187  ;;  %v1419_v33 = vrot.slane %v2826_v54, %v2520_v55 }
 0x34e   :  { %v968_v10 = vpop.permute.xlu1 %967  ;;  %v798_v19 = vpop.permute.xlu0 %797 }
 0x34f   :  { %v992_v35 = vmul.f32 %v987_v9, %v968_v10  ;;  %v997_v52 = vmul.f32 %v2180_v63, %v2882_v38  ;;  %v996_v41 = vmul.f32 %v2182_v28, %v2884_v20  ;;  %v2190_v23 = vpop.eup %2189  ;;  %v1425_v56 = vmul.f32 %v1419_v33, %v2869_v12 }
 0x350   :  { %v2192_v3 = vpop.eup %2191  ;;  %v702_v10 = vmul.f32 %v689_v42, %v2856_v15 }
 0x351   :  { %v2892_v61 = vadd.f32 %v997_v52, %v993_v0  ;;  %v2894_v17 = vadd.f32 %v996_v41, %v992_v35  ;;  %v2194_v26 = vpop.eup %2193  ;;  %v811_v41 = vmul.f32 %v798_v19, %v2874_v14  ;;  %v1495_v14 = vsub.f32 0.0, %v2494_v34 }
 0x352   :  { %v1076_v47 = vpop.permute.xlu1 %1075  ;;  %v906_v11 = vpop.permute.xlu0 %905  ;;  %v706_v52 = vsel %vm272_vm1, %v702_v10, 0.0 }
 0x353   :  { %v1100_v58 = vmul.f32 %v1095_v57, %v1076_v47  ;;  %v1105_v36 = vmul.f32 %v2184_v62, %v2892_v61  ;;  %v1104_v2 = vmul.f32 %v2186_v7, %v2894_v17  ;;  %v2196_v39 = vpop.eup %2195  ;;  %v815_v15 = vsel %vm272_vm1, %v811_v41, 0.0 }
 0x354   :  { %v2198_v18 = vpop.eup %2197  ;;  %v919_v42 = vmul.f32 %v906_v11, %v2882_v38 }
 0x355   :  { %v2901_v43 = vadd.f32 %v1105_v36, %v1101_v6  ;;  %v2903_v46 = vadd.f32 %v1104_v2, %v1100_v58 }
 0x356   :  { %v1184_v29 = vpop.permute.xlu1 %1183  ;;  %v1014_v28 = vpop.permute.xlu0 %1013 }
 0x357   :  { %v1208_v1 = vmul.f32 %v1203_v13, %v1184_v29  ;;  %v1213_v27 = vmul.f32 %v2188_v51, %v2901_v43  ;;  %v1212_v25 = vmul.f32 %v2190_v23, %v2903_v46  ;;  %v923_v29 = vsel %vm272_vm1, %v919_v42, 0.0 }
 0x359   :  { %v2910_v40 = vadd.f32 %v1213_v27, %v1209_v48  ;;  %v2912_v45 = vadd.f32 %v1212_v25, %v1208_v1 }
 0x35a   :  { %v1292_v53 = vpop.permute.xlu1 %1291  ;;  %v1122_v62 = vpop.permute.xlu0 %1121 }
 0x35b   :  { %v1316_v4 = vmul.f32 %v1311_v59, %v1292_v53  ;;  %v1321_v31 = vmul.f32 %v2192_v3, %v2910_v40  ;;  %v1320_v60 = vmul.f32 %v2194_v26, %v2912_v45  ;;  %v1496_v3 = vsub.f32 0.0, %v2490_v32 }
 0x35d   :  { %v2919_v24 = vadd.f32 %v1321_v31, %v1317_v50  ;;  %v2921_v49 = vadd.f32 %v1320_v60, %v1316_v4  ;;  %v1135_v4 = vmul.f32 %v1122_v62, %v2901_v43 }
 0x35e   :  { %v1400_v9 = vpop.permute.xlu1 %1399  ;;  %v1230_v19 = vpop.permute.xlu0 %1229 }
 0x35f   :  { %v1424_v63 = vmul.f32 %v1419_v33, %v1400_v9  ;;  %v1429_v16 = vmul.f32 %v2196_v39, %v2919_v24  ;;  %v1428_v5 = vmul.f32 %v2198_v18, %v2921_v49  ;;  %v1243_v43 = vmul.f32 %v1230_v19, %v2910_v40 }
 0x361   :  { %v2927_v0 = vadd.f32 %v1429_v16, %v1425_v56  ;;  %v2929_v35 = vadd.f32 %v1428_v5, %v1424_v63  ;;  %v1499_v56 = vmul.f32 1.442695, %v1496_v3 }
 0x362   :  { %v685_v55 = vpop.permute.xlu1 %684  ;;  %v1338_v31 = vpop.permute.xlu0 %1337 }
 0x363   :  { %v701_v54 = vmul.f32 %v685_v55, %v2846_v44  ;;  %v1351_v40 = vmul.f32 %v1338_v31, %v2919_v24 }
 0x365   :  { %v705_v12 = vsel %vm272_vm1, %v701_v54, 0.0 }
 0x366   :  { %v707_v57 = vadd.f32 %v706_v52, %v705_v12  ;;  %v794_v7 = vpop.permute.xlu1 %793  ;;  %v1446_v62 = vpop.permute.xlu0 %1445 }
 0x367   :  { %v810_v47 = vmul.f32 %v794_v7, %v2864_v37  ;;  %v1027_v37 = vmul.f32 %v1014_v28, %v2892_v61  ;;  %v1139_v28 = vsel %vm272_vm1, %v1135_v4, 0.0 }
 0x368   :  { %v708_v6 = vrot.slane %v707_v57, 4 }
 0x369   :  { %v814_v58 = vsel %vm272_vm1, %v810_v47, 0.0  ;;  %v1031_v50 = vsel %vm272_vm1, %v1027_v37, 0.0 }
 0x36a   :  { %v709_v36 = vadd.f32 %v708_v6, %v707_v57  ;;  %v816_v44 = vadd.f32 %v815_v15, %v814_v58  ;;  %v902_v2 = vpop.permute.xlu1 %901  ;;  %v1247_v6 = vsel %vm272_vm1, %v1243_v43, 0.0 }
 0x36b   :  { %v918_v51 = vmul.f32 %v902_v2, %v2884_v20  ;;  %v1497_v20 = vmul.f32 1.442695, %v1495_v14 }
 0x36c   :  { %v710_v13 = vrot.slane %v709_v36, 2  ;;  %v817_v23 = vrot.slane %v816_v44, 4 }
 0x36d   :  { %v922_v48 = vsel %vm272_vm1, %v918_v51, 0.0  ;;  %2199 = vpow2.f32 %v1497_v20 }
 0x36e   :  { %v711_v1 = vadd.f32 %v710_v13, %v709_v36  ;;  %v818_v38 = vadd.f32 %v817_v23, %v816_v44  ;;  %v924_v27 = vadd.f32 %v923_v29, %v922_v48  ;;  %v1010_v25 = vpop.permute.xlu1 %1009  ;;  %2201 = vpow2.f32 %v1499_v56  ;;  %v1457_v29 = vpop.permute.xlu0 %1456 }
 0x36f   :  { %v1026_v59 = vmul.f32 %v1010_v25, %v2894_v17  ;;  %v1355_v13 = vsel %vm272_vm1, %v1351_v40, 0.0  ;;  %v1459_v23 = vmul.f32 %v1446_v62, %v2927_v0  ;;  %v1461_v0 = vmul.f32 %v1457_v29, %v2786_v8 }
 0x370   :  { %v712_v26 = vrot.slane %v711_v1, 1  ;;  %v819_v11 = vrot.slane %v818_v38, 2  ;;  %v925_v53 = vrot.slane %v924_v27, 4 }
 0x371   :  { %v1030_v61 = vsel %vm272_vm1, %v1026_v59, 0.0  ;;  %v1472_v56 = vsel %vm272_vm1, %v1461_v0, 0.0  ;;  %v1648_v0 = vld [vmem:[%s3100_s15 + $0x10] sm:$0xff] }
 0x372   :  { %v713_v60 = vadd.f32 %v712_v26, %v711_v1  ;;  %v820_v39 = vadd.f32 %v819_v11, %v818_v38  ;;  %v926_v33 = vadd.f32 %v925_v53, %v924_v27  ;;  %v1032_v18 = vadd.f32 %v1031_v50, %v1030_v61  ;;  %v1118_v9 = vpop.permute.xlu1 %1117 }
 0x373   :  { %v1134_v63 = vmul.f32 %v1118_v9, %v2903_v46  ;;  %v1463_v26 = vsel %vm272_vm1, %v1459_v23, 0.0 }
 0x374   :  { %724 = vst.msk [vmem:[#allocation3] sm:$0x1] %vm723_vm5, %v713_v60  ;;  %v821_v17 = vrot.slane %v820_v39, 1  ;;  %v927_v16 = vrot.slane %v926_v33, 2  ;;  %v1033_v5 = vrot.slane %v1032_v18, 4 }
 0x375   :  { %v1138_v10 = vsel %vm272_vm1, %v1134_v63, 0.0 }
 0x376   :  { %v822_v55 = vadd.f32 %v821_v17, %v820_v39  ;;  %v928_v54 = vadd.f32 %v927_v16, %v926_v33  ;;  %v1034_v52 = vadd.f32 %v1033_v5, %v1032_v18  ;;  %v1140_v41 = vadd.f32 %v1139_v28, %v1138_v10  ;;  %v1226_v12 = vpop.permute.xlu1 %1225 }
 0x377   :  { %v1242_v46 = vmul.f32 %v1226_v12, %v2912_v45 }
 0x378   :  { %832 = vst.msk [vmem:[#allocation3 + $0x1] sm:$0x1] %vm723_vm5, %v822_v55  ;;  %v929_v57 = vrot.slane %v928_v54, 1  ;;  %v1035_v7 = vrot.slane %v1034_v52, 2  ;;  %v1141_v47 = vrot.slane %v1140_v41, 4 }
 0x379   :  { %v1246_v15 = vsel %vm272_vm1, %v1242_v46, 0.0 }
 0x37a   :  { %v930_v42 = vadd.f32 %v929_v57, %v928_v54  ;;  %v1036_v58 = vadd.f32 %v1035_v7, %v1034_v52  ;;  %v1142_v36 = vadd.f32 %v1141_v47, %v1140_v41  ;;  %v1248_v44 = vadd.f32 %v1247_v6, %v1246_v15  ;;  %v1334_v2 = vpop.permute.xlu1 %1333  ;;  %v2200_v20 = vpop.eup %2199  ;;  %v1883_v6 = vld [vmem:[%s3096_s11] ss:$0 sm:$0xff] }
 0x37b   :  { %v1350_v51 = vmul.f32 %v1334_v2, %v2921_v49  ;;  %v1501_v39 = vadd.f32 1.0, %v2200_v20  ;;  %v1491_v40 = vmul.f32 %v1883_v6, %v2452_v21  ;;  %v2215_v21 = vld [vmem:[%s3112_s20 + $0x8] sm:$0xff] }
 0x37c   :  { %940 = vst.msk [vmem:[#allocation3 + $0x2] sm:$0x1] %vm723_vm5, %v930_v42  ;;  %v1037_v45 = vrot.slane %v1036_v58, 1  ;;  %v1143_v14 = vrot.slane %v1142_v36, 2  ;;  %v1249_v19 = vrot.slane %v1248_v44, 4 }
 0x37d   :  { %v1354_v24 = vsel %vm272_vm1, %v1350_v51, 0.0  ;;  %2203 = vrcp.f32 %v1501_v39 }
 0x37e   :  { %v1038_v37 = vadd.f32 %v1037_v45, %v1036_v58  ;;  %v1144_v48 = vadd.f32 %v1143_v14, %v1142_v36  ;;  %v1250_v1 = vadd.f32 %v1249_v19, %v1248_v44  ;;  %v1356_v38 = vadd.f32 %v1355_v13, %v1354_v24  ;;  %v1442_v27 = vpop.permute.xlu1 %1441 }
 0x37f   :  { %v1458_v25 = vmul.f32 %v1442_v27, %v2929_v35  ;;  %v2202_v35 = vpop.eup %2201  ;;  %v1492_v44 = vmul.f32 %v1883_v6, %v2454_v22  ;;  %v2216_v22 = vld [vmem:[%s3112_s20] sm:$0xff]  ;;  %v1749_v6 = vld [vmem:[%s3102_s17 + $0x8] sm:$0xff] }
 0x380   :  { %1048 = vst.msk [vmem:[#allocation3 + $0x3] sm:$0x1] %vm723_vm5, %v1038_v37  ;;  %v1145_v49 = vrot.slane %v1144_v48, 1  ;;  %v1251_v3 = vrot.slane %v1250_v1, 2  ;;  %v1357_v59 = vrot.slane %v1356_v38, 4  ;;  %v1502_v28 = vadd.f32 1.0, %v2202_v35 }
 0x381   :  { %v1462_v11 = vsel %vm272_vm1, %v1458_v25, 0.0 }
 0x382   :  { %v1146_v53 = vadd.f32 %v1145_v49, %v1144_v48  ;;  %v1252_v50 = vadd.f32 %v1251_v3, %v1250_v1  ;;  %v1358_v4 = vadd.f32 %v1357_v59, %v1356_v38  ;;  %v1464_v61 = vadd.f32 %v1463_v26, %v1462_v11  ;;  %v1453_v31 = vpop.permute.xlu1 %1452  ;;  %v1649_v26 = vld [vmem:[%s3100_s15 + $0x18] sm:$0xff]  ;;  %v1647_v11 = vld [vmem:[%s3100_s15 + $0x8] sm:$0xff] }
 0x383   :  { %v1460_v60 = vmul.f32 %v1453_v31, %v2788_v30  ;;  %2205 = vrcp.f32 %v1502_v28  ;;  %2066 = vmatprep.subr.mxu0 %v1649_v26  ;;  %v1887_v28 = vld [vmem:[%s3099_s14] ss:$0 sm:$0xff] }
 0x384   :  { %1156 = vst.msk [vmem:[#allocation3 + $0x4] sm:$0x1] %vm723_vm5, %v1146_v53  ;;  %v1253_v33 = vrot.slane %v1252_v50, 1  ;;  %v1359_v18 = vrot.slane %v1358_v4, 2  ;;  %v1465_v9 = vrot.slane %v1464_v61, 4  ;;  %2067 = vmatpush3.msra.mxu0 %v1649_v26  ;;  %v1646_v53 = vld [vmem:[%s3100_s15] sm:$0xff] }
 0x385   :  { %v1471_v8 = vsel %vm272_vm1, %v1460_v60, 0.0  ;;  %2068 = vmatprep.subr.mxu0 %v1648_v0 }
 0x386   :  { %v1254_v63 = vadd.f32 %v1253_v33, %v1252_v50  ;;  %v1360_v17 = vadd.f32 %v1359_v18, %v1358_v4  ;;  %v1466_v16 = vadd.f32 %v1465_v9, %v1464_v61  ;;  %v1473_v5 = vadd.f32 %v1472_v56, %v1471_v8  ;;  %2069 = vmatpush3.msra.mxu0 %v1648_v0  ;;  %v1763_v50 = vld [vmem:[%s3102_s17 + $0x78] sm:$0xff]  ;;  %v1762_v4 = vld [vmem:[%s3102_s17 + $0x70] sm:$0xff]  ;;  %v1761_v61 = vld [vmem:[%s3102_s17 + $0x68] sm:$0xff] }
 0x387   :  { %2070 = vmatprep.subr.mxu0 %v1647_v11  ;;  %2077 = vmatprep.subr.mxu1 %v1763_v50  ;;  %v1886_v8 = vld [vmem:[%s3098_s13] ss:$0 sm:$0xff]  ;;  %s2217_s13 = scalar_lea.vmem %s1856_s5, 256 }
 0x388   :  { %1264 = vst.msk [vmem:[#allocation3 + $0x5] sm:$0x1] %vm723_vm5, %v1254_v63  ;;  %v1361_v30 = vrot.slane %v1360_v17, 1  ;;  %v1467_v43 = vrot.slane %v1466_v16, 2  ;;  %v1474_v10 = vrot.slane %v1473_v5, 4  ;;  %2071 = vmatpush3.msra.mxu0 %v1647_v11  ;;  %p2218_p0 = scmp.ne.s32.totalorder %s1856_s5, %s2217_s13  ;;  %p2223_p2 = scmp.lt.s32.totalorder %s2217_s13, %s2217_s13 }
 0x389   :  { %2072 = vmatprep.subr.mxu0 %v1646_v53 }
 0x38a   :  { %v1362_v55 = vadd.f32 %v1361_v30, %v1360_v17  ;;  %v1468_v54 = vadd.f32 %v1467_v43, %v1466_v16  ;;  %v1475_v52 = vadd.f32 %v1474_v10, %v1473_v5  ;;  %v2204_v47 = vpop.eup %2203  ;;  %2073 = vmatpush3.msra.mxu0 %v1646_v53  ;;  %v1760_v10 = vld [vmem:[%s3102_s17 + $0x60] sm:$0xff]  ;;  %p2224_p3 = por %p2223_p2, %p2222_p1 }
 0x38b   :  { %v1507_v42 = vmul.f32 %v2204_v47, %v2494_v34  ;;  %v1750_v47 = vld [vmem:[%s3102_s17 + $0x10] sm:$0xff] }
 0x38c   :  { %1372 = vst.msk [vmem:[#allocation3 + $0x6] sm:$0x1] %vm723_vm5, %v1362_v55  ;;  %v1469_v41 = vrot.slane %v1468_v54, 1  ;;  %v1476_v12 = vrot.slane %v1475_v52, 2  ;;  %v1759_v55 = vld [vmem:[%s3102_s17 + $0x58] sm:$0xff]  ;;  %p2225_p4 = pnand %p2224_p3, %p2218_p0 }
 0x38e   :  { %v1470_v46 = vadd.f32 %v1469_v41, %v1468_v54  ;;  %v1477_v62 = vadd.f32 %v1476_v12, %v1475_v52  ;;  %v1758_v54 = vld [vmem:[%s3102_s17 + $0x50] sm:$0xff]  ;;  %v1757_v52 = vld [vmem:[%s3102_s17 + $0x48] sm:$0xff]  ;;  %v1756_v41 = vld [vmem:[%s3102_s17 + $0x40] sm:$0xff] }
 0x38f   :  { %v1755_v12 = vld [vmem:[%s3102_s17 + $0x38] sm:$0xff] }
 0x390   :  { %1480 = vst.msk [vmem:[#allocation3 + $0x7] sm:$0x1] %vm723_vm5, %v1470_v46  ;;  %v1478_v57 = vrot.slane %v1477_v62, 1  ;;  %v2206_v36 = vpop.eup %2205  ;;  %v1754_v46 = vld [vmem:[%s3102_s17 + $0x30] sm:$0xff] }
 0x391   :  { %v1508_v45 = vmul.f32 %v2206_v36, %v2490_v32 }
 0x392   :  { %v1479_v7 = vadd.f32 %v1478_v57, %v1477_v62  ;;  %v1753_v62 = vld [vmem:[%s3102_s17 + $0x28] sm:$0xff]  ;;  %v1752_v57 = vld [vmem:[%s3102_s17 + $0x20] sm:$0xff] }
 0x394   :  { %1481 = vst.msk [vmem:[#allocation3 + $0xf] sm:$0x1] %vm723_vm5, %v1479_v7  ;;  %v1751_v7 = vld [vmem:[%s3102_s17 + $0x18] sm:$0xff] }
 0x397   :  { %v1482_v15 = vld [vmem:[#allocation3] sm:$0xff] }
 0x398   :  { %v1493_v58 = vadd.f32 %v1491_v40, %v1482_v15  ;;  %v1748_v40 = vld [vmem:[%s3102_s17] sm:$0xff] }
 0x399   :  { %v1888_v15 = vld [vmem:[%s3101_s16] ss:$0 sm:$0xff] }
 0x39a   :  { %v1509_v2 = vmul.f32 %v1507_v42, %v1493_v58 }
 0x39b   :  { %v1483_v51 = vld [vmem:[#allocation3 + $0x8] sm:$0xff] }
 0x39c   :  { %2063 = vmatprep.mubr.msk.f32.mxu1 %vm272_vm1, %v1509_v2  ;;  %v1494_v14 = vadd.f32 %v1492_v44, %v1483_v51 }
 0x39e   :  { %v1510_v19 = vmul.f32 %v1508_v45, %v1494_v14 }
 0x3a0   :  { %2064 = vmatmul.mubr.msk.f32.vlgmr.msra.gmra.mxu1 %vm272_vm1, %v1510_v19 }
 0x3a1   :  { %2078 = vmatpush3.msra.mxu1 %v1763_v50 }
 0x3a2   :  { %2079 = vmatprep.subr.mxu1 %v1762_v4 }
 0x3a3   :  { %2080 = vmatpush3.msra.mxu1 %v1762_v4 }
 0x3a4   :  { %2081 = vmatprep.subr.mxu1 %v1761_v61 }
 0x3a5   :  { %2082 = vmatpush3.msra.mxu1 %v1761_v61 }
 0x3a6   :  { %2083 = vmatprep.subr.mxu1 %v1760_v10 }
 0x3a7   :  { %2084 = vmatpush3.msra.mxu1 %v1760_v10 }
 0x3a8   :  { %2085 = vmatprep.subr.mxu1 %v1759_v55 }
 0x3a9   :  { %2086 = vmatpush3.msra.mxu1 %v1759_v55 }
 0x3aa   :  { %2087 = vmatprep.subr.mxu1 %v1758_v54 }
 0x3ab   :  { %2088 = vmatpush3.msra.mxu1 %v1758_v54 }
 0x3ac   :  { %2089 = vmatprep.subr.mxu1 %v1757_v52 }
 0x3ad   :  { %2090 = vmatpush3.msra.mxu1 %v1757_v52 }
 0x3ae   :  { %2091 = vmatprep.subr.mxu1 %v1756_v41 }
 0x3af   :  { %2092 = vmatpush3.msra.mxu1 %v1756_v41 }
 0x3b0   :  { %2093 = vmatprep.subr.mxu1 %v1755_v12 }
 0x3b1   :  { %2094 = vmatpush3.msra.mxu1 %v1755_v12 }
 0x3b2   :  { %2095 = vmatprep.subr.mxu1 %v1754_v46 }
 0x3b3   :  { %2096 = vmatpush3.msra.mxu1 %v1754_v46 }
 0x3b4   :  { %2097 = vmatprep.subr.mxu1 %v1753_v62 }
 0x3b5   :  { %2098 = vmatpush3.msra.mxu1 %v1753_v62 }
 0x3b6   :  { %2099 = vmatprep.subr.mxu1 %v1752_v57 }
 0x3b7   :  { %2100 = vmatpush3.msra.mxu1 %v1752_v57 }
 0x3b8   :  { %2101 = vmatprep.subr.mxu1 %v1751_v7 }
 0x3b9   :  { %2102 = vmatpush3.msra.mxu1 %v1751_v7 }
 0x3ba   :  { %2103 = vmatprep.subr.mxu1 %v1750_v47 }
 0x3bb   :  { %2104 = vmatpush3.msra.mxu1 %v1750_v47 }
 0x3bc   :  { %2105 = vmatprep.subr.mxu1 %v1749_v6 }
 0x3bd   :  { %2106 = vmatpush3.msra.mxu1 %v1749_v6 }
 0x3be   :  { %2107 = vmatprep.subr.mxu1 %v1748_v40 }
 0x3bf   :  { %2108 = vmatpush3.msra.mxu1 %v1748_v40 }
 0x460   :  { %v2065_v13 = vpop.f32.mrf.mxu1 }
 0x461   :  { %v2989_v34 = vadd.f32 %v2215_v21, %v2065_v13 }
 0x462   :  { %v1591_v23 = vpop.f32.mrf.mxu1 }
 0x463   :  { %v2994_v24 = vadd.f32 %v2216_v22, %v1591_v23  ;;  %v1605_v32 = vsel %vm67_vm0, %v2989_v34, 0.0 }
 0x464   :  { %1606 = vadd.xlane.f32.xlu0 %v1605_v32 }
 0x465   :  { %v1602_v29 = vsel %vm67_vm0, %v2994_v24, 0.0 }
 0x466   :  { %1603 = vadd.xlane.f32.xlu1 %v1602_v29  ;;  %v1891_v29 = vld [vmem:[%s3103_s18] ss:$0 sm:$0xff] }
 0x4ed   :  { %v1607_v37 = vpop.xlane.xlu0 %1606 }
 0x4ee   :  { %v1609_v48 = vmul.f32 0.03125, %v1607_v37 }
 0x4ef   :  { %v1604_v1 = vpop.xlane.xlu1 %1603 }
 0x4f0   :  { %v1611_v38 = vsub.f32 %v2989_v34, %v1609_v48  ;;  %v1608_v27 = vmul.f32 0.03125, %v1604_v1 }
 0x4f2   :  { %v1610_v25 = vsub.f32 %v2994_v24, %v1608_v27  ;;  %v1613_v49 = vmul.f32 %v1611_v38, %v1611_v38 }
 0x4f4   :  { %v1617_v3 = vsel %vm67_vm0, %v1613_v49, 0.0  ;;  %v1612_v59 = vmul.f32 %v1610_v25, %v1610_v25 }
 0x4f5   :  { %1618 = vadd.xlane.f32.xlu1 %v1617_v3 }
 0x4f6   :  { %v1614_v20 = vsel %vm67_vm0, %v1612_v59, 0.0 }
 0x4f7   :  { %1615 = vadd.xlane.f32.xlu0 %v1614_v20 }
 0x57e   :  { %v1619_v31 = vpop.xlane.xlu1 %1618 }
 0x57f   :  { %v1621_v60 = vmul.f32 0.03125, %v1619_v31 }
 0x580   :  { %v1616_v35 = vpop.xlane.xlu0 %1615 }
 0x581   :  { %v1623_v39 = vadd.f32 1e-05, %v1621_v60  ;;  %v1620_v33 = vmul.f32 0.03125, %v1616_v35 }
 0x583   :  { %2207 = vrsqrt.f32 %v1623_v39  ;;  %v1622_v18 = vadd.f32 1e-05, %v1620_v33 }
 0x585   :  { %2209 = vrsqrt.f32 %v1622_v18 }
 0x590   :  { %v2208_v9 = vpop.eup %2207 }
 0x591   :  { %v1627_v56 = vmul.f32 %v2208_v9, %v1611_v38 }
 0x592   :  { %v2210_v63 = vpop.eup %2209 }
 0x593   :  { %v1626_v17 = vmul.f32 %v2210_v63, %v1610_v25  ;;  %v1636_v16 = vmul.f32 %v1886_v8, %v1627_v56 }
 0x595   :  { %v1635_v5 = vmul.f32 %v1886_v8, %v1626_v17  ;;  %v1645_v43 = vadd.f32 %v1887_v28, %v1636_v16 }
 0x597   :  { %v1644_v30 = vadd.f32 %v1887_v28, %v1635_v5 }
 0x599   :  { %2074 = vmatprep.mubr.msk.f32.mxu0 %vm67_vm0, %v1644_v30 }
 0x59a   :  { %2075 = vmatmul.mubr.msk.f32.vlgmr.msra.gmra.mxu0 %vm67_vm0, %v1645_v43 }
 0x65a   :  { %v2076_v42 = vpop.f32.mrf.mxu0 }
 0x65b   :  { %v1735_v58 = vadd.f32 %v2076_v42, %v1888_v15 }
 0x65c   :  { %v1729_v36 = vpop.f32.mrf.mxu0 }
 0x65d   :  { %v1741_v44 = vmul.f32 0.70710677, %v1735_v58  ;;  %v1730_v2 = vadd.f32 %v1888_v15, %v1729_v36  ;;  %v1739_v23 = vmul.f32 0.5, %v1735_v58 }
 0x65f   :  { %2211 = verf.f32 %v1741_v44  ;;  %v1740_v51 = vmul.f32 0.70710677, %v1730_v2  ;;  %v1738_v13 = vmul.f32 0.5, %v1730_v2 }
 0x661   :  { %2213 = verf.f32 %v1740_v51 }
 0x66c   :  { %v2212_v45 = vpop.eup %2211 }
 0x66d   :  { %v1745_v19 = vadd.f32 1.0, %v2212_v45 }
 0x66e   :  { %v2214_v14 = vpop.eup %2213 }
 0x66f   :  { %v1744_v21 = vadd.f32 1.0, %v2214_v14  ;;  %v1747_v32 = vmul.f32 %v1745_v19, %v1739_v23 }
 0x671   :  { %v1746_v22 = vmul.f32 %v1744_v21, %v1738_v13 }
 0x673   :  { %2109 = vmatprep.mubr.f32.mxu1 %v1746_v22 }
 0x674   :  { %2110 = vmatmul.mubr.f32.vlgmr.msra.gmra.mxu1 %v1747_v32 }
 0x734   :  { %v2111_v37 = vpop.f32.mrf.mxu1 }
 0x735   :  { %v1843_v48 = vadd.f32 %v2111_v37, %v1891_v29 }
 0x736   :  { %v1837_v1 = vpop.f32.mrf.mxu1 }
 0x737   :  { %v1847_v38 = vadd.f32 %v1843_v48, %v2989_v34  ;;  %v1838_v27 = vadd.f32 %v1891_v29, %v1837_v1 }
 0x739   :  { %1849 = vst.msk [vmem:[#allocation4 + $0x8] sm:$0xff] %vm67_vm0, %v1847_v38  ;;  %v1846_v25 = vadd.f32 %v1838_v27, %v2994_v24 }
 0x73b   :  { %1848 = vst.msk [vmem:[#allocation4] sm:$0xff] %vm67_vm0, %v1846_v25 }
 0x73c   :  { %2228 = shalt.err (!%p2225_p4)
}
 0x73d   :  { %s2240_s18 = smov 128   ;;  %s2241_s11 = smov 8  }
 0x73e   :  { %1861 = dma.vmem_to_hbm [thread:$0]  %s1856_s5, 256, %s3104_s19, [#allocation5], %s2240_s18, %s2240_s18, %s2241_s11  }
 0x73f   :  { %2237 = dma.done.wait [#allocation5], 256  }
 0x740   :  { %2238 = vsyncadd [#allocation5], 4294967040 }
 0x741   :  { %1865 = vsyncpa [#allocation5], 1 }

</bundles_post_ra>
